<compile_context>
chip_gen: v7x
topology: tpu7x:2x2x1
jax: 0.10.0
libtpu: 0.0.40
codegen_flags: <defaults>
</compile_context>

<pallas_src>
import functools

import jax
import jax.numpy as jnp
from jax import lax
from jax.experimental import pallas as pl
from jax.experimental.pallas import tpu as pltpu


# ----------------------------------------------------------------------------
# In-kernel helper: 3x3 conv (stride 1, zero column padding) on a row window.
# ----------------------------------------------------------------------------
def _conv3x3(x3d, w_ref, *, rout, fold):
    """3x3 cross-correlation on a row window whose out-of-image rows are 0.

    x3d:   (rout + 2, W, Cin) in the matmul dtype (zero rows supply the conv's
           zero padding along H).
    w_ref: Ref of shape (3, 3*Cin, Cout), laid out as w[kx, ky*Cin + ci, co]
           (BatchNorm scale already folded in).
    Returns (rout, W, Cout) float32 (pre-bias).
    """
    rin, wd, cin = x3d.shape
    cout = w_ref.shape[-1]
    n = rout * wd

    # Flatten rows*width onto the sublane axis once (layout-preserving when
    # W % 8 == 0); per-ky slabs below are aligned sublane slices.
    xf = x3d.reshape(rin * wd, cin)

    if fold:
        # Fold the 3 ky taps into the contraction: K = 3*Cin, 3 matmuls total.
        lhs = jnp.concatenate(
            [xf[0:n], xf[wd:wd + n], xf[2 * wd:2 * wd + n]], axis=-1)

        def tap(kx):
            return jnp.dot(lhs, w_ref[kx], preferred_element_type=jnp.float32)
    else:
        # C >= 128: K is already deep enough; skip the lane concat.
        def tap(kx):
            wk = w_ref[kx]
            acc = jnp.dot(xf[0:n], wk[0:cin],
                          preferred_element_type=jnp.float32)
            for ky in (1, 2):
                acc = acc + jnp.dot(xf[ky * wd:ky * wd + n],
                                    wk[ky * cin:(ky + 1) * cin],
                                    preferred_element_type=jnp.float32)
            return acc

    # Column taps: out[:, c] = p0[:, c-1] + p1[:, c] + p2[:, c+1], with the
    # boundary columns zeroed (= left/right zero padding).  The shifts run on
    # the XLU via pltpu.roll on the flattened (rout*W, Cout) accumulator; the
    # wrap-around element is killed by the boundary-column mask.
    col = lax.broadcasted_iota(jnp.int32, (n, 1), 0) % wd

    acc = tap(1)                                        # center tap
    p0 = pltpu.roll(tap(0), 1, axis=0)                  # shift right by 1 col
    acc = acc + jnp.where(col == 0, 0.0, p0)
    p2 = pltpu.roll(tap(2), n - 1, axis=0)              # shift left by 1 col
    acc = acc + jnp.where(col == wd - 1, 0.0, p2)

    return acc.reshape(rout, wd, cout)


# ----------------------------------------------------------------------------
# Fused DoubleConv kernel: (conv3x3 + BN-bias + ReLU) x 2 on one row tile.
# ----------------------------------------------------------------------------
def _double_conv_kernel(xt_ref, xc_ref, xb_ref, w1_ref, b1_ref, w2_ref, b2_ref,
                        out_ref, *, matmul_dtype, fold1, fold2):
    th = xc_ref.shape[1]                      # output rows per grid step
    h_total = th * pl.num_programs(1)         # full image height
    r0 = pl.program_id(1) * th                # first output row of this tile

    top = xt_ref[0]                           # (2, W, Cin) bf16 halo
    mid = xc_ref[0]                           # (th, W, Cin) center (in-bounds)
    bot = xb_ref[0]                           # (2, W, Cin) bf16 halo

    # Mask ONLY the halo rows (clamped duplicates at the image border); rows
    # outside the image become exact zeros (= zero padding along H).
    hi = lax.broadcasted_iota(jnp.int32, (2, 1, 1), 0)
    top = jnp.where(hi + (r0 - 2) >= 0, top, jnp.zeros_like(top))
    bot = jnp.where(hi + (r0 + th) < h_total, bot, jnp.zeros_like(bot))
    window = jnp.concatenate([top, mid, bot], axis=0)   # (th+4, W, Cin)

    # conv1 (BN scale folded into weights) + bias + ReLU, rows r0-1 .. r0+th.
    y1 = _conv3x3(window, w1_ref, rout=th + 2, fold=fold1)
    y1 = jnp.maximum(y1 + b1_ref[...], 0.0)             # f32 on the VPU
    mi = lax.broadcasted_iota(jnp.int32, (th + 2, 1, 1), 0) + (r0 - 1)
    y1 = jnp.where(jnp.logical_and(mi >= 0, mi < h_total), y1, 0.0)

    # conv2 + bias + ReLU -> output rows r0 .. r0+th-1 (y1 stays f32; only the
    # conv2 matmul LHS is cast to the matmul dtype).
    y2 = _conv3x3(y1.astype(matmul_dtype), w2_ref, rout=th, fold=fold2)
    y2 = jnp.maximum(y2 + b2_ref[...], 0.0)
    out_ref[0] = y2.astype(out_ref.dtype)


# ----------------------------------------------------------------------------
# Wrapper-side tiling / VMEM sizing.
# ----------------------------------------------------------------------------
def _vmem_bytes_estimate(th, w, cin, cmid, cout, in_bytes, out_bytes):
    """Rough per-grid-step VMEM working set (double-buffered blocks + temps)."""
    f32 = 4
    blocks = 2 * w * ((th + 4) * cin * in_bytes + th * cout * out_bytes)
    weights = 2 * 9 * (cin * cmid + cmid * cout) * in_bytes + (cmid + cout) * f32
    n1, n2 = (th + 2) * w, th * w
    temps = ((th + 4) * w * cin * in_bytes          # window
             + n1 * 3 * cin * in_bytes              # folded LHS, conv1
             + 3 * n1 * cmid * f32                  # conv1 acc + rolled partial
             + n1 * cmid * (f32 + in_bytes)         # y1 (f32) + bf16 LHS copy
             + n2 * 3 * cmid * in_bytes             # folded LHS, conv2
             + 3 * n2 * cout * f32)                 # conv2 acc + rolled partial
    return blocks + weights + temps


def _pick_tile_rows(h, w, cin, cmid, cout, in_bytes, out_bytes,
                    budget_bytes=24 * 1024 * 1024):
    """Largest even row tile dividing H whose working set fits the budget."""
    for cand in (256, 128, 64, 32, 16, 8, 4, 2):
        if cand <= h and h % cand == 0 and cand % 2 == 0:
            if _vmem_bytes_estimate(cand, w, cin, cmid, cout,
                                    in_bytes, out_bytes) <= budget_bytes:
                return cand
    raise ValueError("input height must be even")


# ----------------------------------------------------------------------------
# Public wrappers.
# ----------------------------------------------------------------------------
def double_conv_nhwc(x_nhwc, params, *, tile_rows=None,
                     matmul_dtype=jnp.bfloat16, out_dtype=None):
    """DoubleConv forward (inference-mode BatchNorm).  NHWC in / NHWC out.

    Output dtype defaults to the matmul dtype (bf16) to halve write-back DMA;
    pass out_dtype=jnp.float32 if a downstream op truly needs f32.
    H must be even and divisible by tile_rows (auto-picked if None).
    """
    n, h, w, cin = x_nhwc.shape
    w1, w2 = params["w1"], params["w2"]
    assert w1.shape[:3] == (3, 3, cin)
    cmid, cout = w1.shape[-1], w2.shape[-1]
    out_dtype = matmul_dtype if out_dtype is None else out_dtype

    in_bytes = jnp.dtype(matmul_dtype).itemsize
    out_bytes = jnp.dtype(out_dtype).itemsize

    th = tile_rows if tile_rows is not None else _pick_tile_rows(
        h, w, cin, cmid, cout, in_bytes, out_bytes)
    # v7x megacore balance: keep >= 2 grid steps when the auto-pick collapses
    # the whole image into a single tile of a single batch element.
    if tile_rows is None and n * (h // th) < 2:
        for smaller in (th // 2, th // 4, th // 8):
            if smaller >= 2 and smaller % 2 == 0 and h % smaller == 0:
                th = smaller
                break
    assert th % 2 == 0 and h % th == 0, (h, th)
    n_tiles = h // th
    hh = th // 2                # halo blocks are 2 rows tall -> h // 2 blocks

    # Fold the BatchNorm scale into the conv weights in f32, reorder to
    # (kx, ky*Cin, Cout) so the row taps fold into the matmul K axis, then
    # cast to the matmul dtype (bf16).  Biases stay f32.
    def prep_w(wgt, scale):
        ci, co = wgt.shape[2], wgt.shape[3]
        wf = wgt.astype(jnp.float32) * scale.reshape(1, 1, 1, co).astype(jnp.float32)
        return jnp.transpose(wf, (1, 0, 2, 3)).reshape(3, 3 * ci, co).astype(matmul_dtype)

    w1m = prep_w(w1, params["s1"])
    w2m = prep_w(w2, params["s2"])
    b1 = params["b1"].reshape(1, cmid).astype(jnp.float32)
    b2 = params["b2"].reshape(1, cout).astype(jnp.float32)

    # Stream the activations in bf16 (halves input DMA and VMEM blocks).
    x = x_nhwc.astype(matmul_dtype)

    kernel = functools.partial(_double_conv_kernel, matmul_dtype=matmul_dtype,
                               fold1=cin < 128, fold2=cmid < 128)

    est = _vmem_bytes_estimate(th, w, cin, cmid, cout, in_bytes, out_bytes)
    # Explicit scoped-VMEM limit with headroom; <= 48 MiB is safe on
    # v5e (128 MiB), v6e (128 MiB) and v7x (64 MiB physical).
    vmem_limit = int(min(max(2 * est, 32 * 1024 * 1024), 48 * 1024 * 1024))

    out = pl.pallas_call(
        kernel,
        out_shape=jax.ShapeDtypeStruct((n, h, w, cout), out_dtype),
        grid_spec=pltpu.PrefetchScalarGridSpec(
            num_scalar_prefetch=0,
            grid=(n, n_tiles),
            in_specs=[
                # 2-row top halo (clamped at the edge; masked in-kernel).
                pl.BlockSpec((1, 2, w, cin),
                             lambda b, t: (b, jnp.maximum(t * hh - 1, 0), 0, 0)),
                # th-row center block.  (Option for v6e if DMA is exposed:
                # pipeline_mode=pl.Buffered(3).)
                pl.BlockSpec((1, th, w, cin), lambda b, t: (b, t, 0, 0)),
                # 2-row bottom halo (clamped; masked in-kernel).
                pl.BlockSpec((1, 2, w, cin),
                             lambda b, t: (b, jnp.minimum((t + 1) * hh,
                                                          h // 2 - 1), 0, 0)),
                pl.BlockSpec((3, 3 * cin, cmid), lambda b, t: (0, 0, 0)),
                pl.BlockSpec((1, cmid), lambda b, t: (0, 0)),
                pl.BlockSpec((3, 3 * cmid, cout), lambda b, t: (0, 0, 0)),
                pl.BlockSpec((1, cout), lambda b, t: (0, 0)),
            ],
            out_specs=pl.BlockSpec((1, th, w, cout), lambda b, t: (b, t, 0, 0)),
        ),
        compiler_params=pltpu.CompilerParams(
            dimension_semantics=("parallel", "parallel"),
            vmem_limit_bytes=vmem_limit),
    )(x, x, x, w1m, b1, w2m, b2)
    return out


def double_conv(x_nchw, params, *, tile_rows=None,
                matmul_dtype=jnp.bfloat16, out_dtype=None):
    """NCHW adapter matching the PyTorch module.  Prefer double_conv_nhwc
    end-to-end in the surrounding model to avoid the extra HBM transposes."""
    x = jnp.transpose(x_nchw, (0, 2, 3, 1))
    y = double_conv_nhwc(x, params, tile_rows=tile_rows,
                         matmul_dtype=matmul_dtype, out_dtype=out_dtype)
    return jnp.transpose(y, (0, 3, 1, 2))


# ----------------------------------------------------------------------------
# Deterministic synthetic parameters (PyTorch Conv2d + BatchNorm2d, folded).
# ----------------------------------------------------------------------------
def _fold_bn(conv_b, gamma, beta, mean, var, eps=1e-5):
    scale = gamma * lax.rsqrt(var + eps)
    bias = beta + scale * (conv_b - mean)
    return scale.reshape(1, -1), bias.reshape(1, -1)


def init_params(key, cin, cout, cmid=None):
    if cmid is None:
        cmid = cout

    def conv_bn(k, ci, co):
        k1, k2, k3, k4, k5, k6 = jax.random.split(k, 6)
        # PyTorch weight layout (Cout, Cin, 3, 3) -> HWIO.
        w_oihw = jax.random.normal(k1, (co, ci, 3, 3), jnp.float32) / jnp.sqrt(9.0 * ci)
        b = 0.05 * jax.random.normal(k2, (co,), jnp.float32)
        gamma = 1.0 + 0.1 * jax.random.normal(k3, (co,), jnp.float32)
        beta = 0.1 * jax.random.normal(k4, (co,), jnp.float32)
        mean = 0.1 * jax.random.normal(k5, (co,), jnp.float32)
        var = 1.0 + 0.1 * jax.random.uniform(k6, (co,), jnp.float32)
        scale, bias = _fold_bn(b, gamma, beta, mean, var)
        return jnp.transpose(w_oihw, (2, 3, 1, 0)), scale, bias

    k1, k2 = jax.random.split(key)
    w1, s1, b1 = conv_bn(k1, cin, cmid)
    w2, s2, b2 = conv_bn(k2, cmid, cout)
    return dict(w1=w1, s1=s1, b1=b1, w2=w2, s2=s2, b2=b2)


def double_conv_reference(x_nchw, params):
    """Pure-JAX f32 reference of the same inference-mode DoubleConv."""
    x = jnp.transpose(x_nchw, (0, 2, 3, 1)).astype(jnp.float32)

    def conv(v, wgt):
        return lax.conv_general_dilated(
            v, wgt, window_strides=(1, 1), padding="SAME",
            dimension_numbers=("NHWC", "HWIO", "NHWC"))

    y = jnp.maximum(conv(x, params["w1"]) * params["s1"] + params["b1"], 0.0)
    y = jnp.maximum(conv(y, params["w2"]) * params["s2"] + params["b2"], 0.0)
    return jnp.transpose(y, (0, 3, 1, 2))


if __name__ == "__main__":
    key = jax.random.PRNGKey(0)
    k_x, k_p = jax.random.split(key)

    # DoubleConv(in_channels=4, out_channels=8) on a (2, 4, 16, 16) input.
    N, CIN, H, W = 2, 4, 16, 16
    COUT = 8
    x = jax.random.normal(k_x, (N, CIN, H, W), jnp.float32)
    params = init_params(k_p, CIN, COUT)

    ref = double_conv_reference(x, params)

    # tile_rows=8 exercises the multi-tile halo path, 16 the single-tile path,
    # None the VMEM-budget auto-pick.
    for th in (8, 16, None):
        fwd = jax.jit(functools.partial(double_conv, params=params, tile_rows=th))
        out = jax.block_until_ready(fwd(x))
        assert out.shape == (N, COUT, H, W), out.shape
        o32 = out.astype(jnp.float32)
        assert bool(jnp.all(jnp.isfinite(o32)))
        # bf16 matmul inputs + bf16 intermediate/output -> ~1e-2 level diffs.
        max_err = float(jnp.max(jnp.abs(o32 - ref)))
        mean_err = float(jnp.mean(jnp.abs(o32 - ref)))
        assert max_err < 0.25 and mean_err < 0.03, (th, max_err, mean_err)

    print("KERNEL_OK")
</pallas_src>

<mosaic_0001>
module attributes {stable_mosaic.version = 11 : i64} {
  func.func @_double_conv_kernel(%arg0: i32, %arg1: i32, %arg2: memref<1x2x16x4xbf16, #tpu.memory_space<vmem>>, %arg3: memref<1x8x16x4xbf16, #tpu.memory_space<vmem>>, %arg4: memref<1x2x16x4xbf16, #tpu.memory_space<vmem>>, %arg5: memref<3x12x8xbf16, #tpu.memory_space<vmem>>, %arg6: memref<1x8xf32, #tpu.memory_space<vmem>>, %arg7: memref<3x24x8xbf16, #tpu.memory_space<vmem>>, %arg8: memref<1x8xf32, #tpu.memory_space<vmem>>, %arg9: memref<1x8x16x8xbf16, #tpu.memory_space<vmem>>) attributes {dimension_semantics = [#tpu.dimension_semantics<parallel>, #tpu.dimension_semantics<parallel>], iteration_bounds = array<i64: 2, 2>, scalar_prefetch = 0 : i64, scratch_operands = 0 : i64, tpu.core_type = #tpu.core_type<tc>, window_params = [{transform_indices = @transform_0, window_bounds = array<i64: 1, 2, 16, 4>}, {transform_indices = @transform_1, window_bounds = array<i64: 1, 8, 16, 4>}, {transform_indices = @transform_2, window_bounds = array<i64: 1, 2, 16, 4>}, {pipeline_mode = #tpu.pipeline_mode<synchronous>, transform_indices = @transform_3, window_bounds = array<i64: 3, 12, 8>}, {pipeline_mode = #tpu.pipeline_mode<synchronous>, transform_indices = @transform_4, window_bounds = array<i64: 1, 8>}, {pipeline_mode = #tpu.pipeline_mode<synchronous>, transform_indices = @transform_5, window_bounds = array<i64: 3, 24, 8>}, {pipeline_mode = #tpu.pipeline_mode<synchronous>, transform_indices = @transform_6, window_bounds = array<i64: 1, 8>}, {transform_indices = @transform_7, window_bounds = array<i64: 1, 8, 16, 8>}]} {
    %c8_i32 = arith.constant 8 : i32
    %0 = arith.muli %arg1, %c8_i32 : i32
    %c0 = arith.constant 0 : index
    %c0_0 = arith.constant 0 : index
    %c0_1 = arith.constant 0 : index
    %c0_2 = arith.constant 0 : index
    %1 = vector.load %arg2[%c0, %c0_0, %c0_1, %c0_2] : memref<1x2x16x4xbf16, #tpu.memory_space<vmem>>, vector<1x2x16x4xbf16>
    %2 = vector.shape_cast %1 : vector<1x2x16x4xbf16> to vector<2x16x4xbf16>
    %c0_3 = arith.constant 0 : index
    %c0_4 = arith.constant 0 : index
    %c0_5 = arith.constant 0 : index
    %c0_6 = arith.constant 0 : index
    %3 = vector.load %arg3[%c0_3, %c0_4, %c0_5, %c0_6] : memref<1x8x16x4xbf16, #tpu.memory_space<vmem>>, vector<1x8x16x4xbf16>
    %4 = vector.shape_cast %3 : vector<1x8x16x4xbf16> to vector<8x16x4xbf16>
    %c0_7 = arith.constant 0 : index
    %c0_8 = arith.constant 0 : index
    %c0_9 = arith.constant 0 : index
    %c0_10 = arith.constant 0 : index
    %5 = vector.load %arg4[%c0_7, %c0_8, %c0_9, %c0_10] : memref<1x2x16x4xbf16, #tpu.memory_space<vmem>>, vector<1x2x16x4xbf16>
    %6 = vector.shape_cast %5 : vector<1x2x16x4xbf16> to vector<2x16x4xbf16>
    %7 = tpu.iota {dimensions = array<i32: 0>} : vector<2x1x1xi32>
    %c2_i32 = arith.constant 2 : i32
    %8 = arith.subi %0, %c2_i32 : i32
    %9 = vector.broadcast %8 : i32 to vector<2x1x1xi32>
    %10 = arith.addi %7, %9 : vector<2x1x1xi32>
    %c0_i32 = arith.constant 0 : i32
    %11 = vector.broadcast %c0_i32 : i32 to vector<2x1x1xi32>
    %12 = arith.cmpi sge, %10, %11 : vector<2x1x1xi32>
    %cst = arith.constant 0.000000e+00 : bf16
    %13 = vector.broadcast %cst : bf16 to vector<2x16x4xbf16>
    %14 = vector.shape_cast %12 : vector<2x1x1xi1> to vector<2x1x1xi1>
    %15 = vector.broadcast %14 : vector<2x1x1xi1> to vector<2x16x4xi1>
    %16 = arith.select %15, %2, %13 : vector<2x16x4xi1>, vector<2x16x4xbf16>
    %c8_i32_11 = arith.constant 8 : i32
    %17 = arith.addi %0, %c8_i32_11 : i32
    %18 = vector.broadcast %17 : i32 to vector<2x1x1xi32>
    %19 = arith.addi %7, %18 : vector<2x1x1xi32>
    %c16_i32 = arith.constant 16 : i32
    %20 = vector.broadcast %c16_i32 : i32 to vector<2x1x1xi32>
    %21 = arith.cmpi slt, %19, %20 : vector<2x1x1xi32>
    %cst_12 = arith.constant 0.000000e+00 : bf16
    %22 = vector.broadcast %cst_12 : bf16 to vector<2x16x4xbf16>
    %23 = vector.shape_cast %21 : vector<2x1x1xi1> to vector<2x1x1xi1>
    %24 = vector.broadcast %23 : vector<2x1x1xi1> to vector<2x16x4xi1>
    %25 = arith.select %24, %6, %22 : vector<2x16x4xi1>, vector<2x16x4xbf16>
    %26 = tpu.concatenate %16, %4, %25 in 0 : vector<2x16x4xbf16>, vector<8x16x4xbf16>, vector<2x16x4xbf16> -> vector<12x16x4xbf16>
    %27 = vector.shape_cast %26 : vector<12x16x4xbf16> to vector<192x4xbf16>
    %28 = vector.extract_strided_slice %27 {offsets = [0, 0], sizes = [160, 4], strides = [1, 1]} : vector<192x4xbf16> to vector<160x4xbf16>
    %29 = vector.extract_strided_slice %27 {offsets = [16, 0], sizes = [160, 4], strides = [1, 1]} : vector<192x4xbf16> to vector<160x4xbf16>
    %30 = vector.extract_strided_slice %27 {offsets = [32, 0], sizes = [160, 4], strides = [1, 1]} : vector<192x4xbf16> to vector<160x4xbf16>
    %31 = tpu.concatenate %28, %29, %30 in 1 : vector<160x4xbf16>, vector<160x4xbf16>, vector<160x4xbf16> -> vector<160x12xbf16>
    %32 = tpu.iota {dimensions = array<i32: 0>} : vector<160x1xi32>
    %c16_i32_13 = arith.constant 16 : i32
    %c0_i32_14 = arith.constant 0 : i32
    %33 = arith.cmpi eq, %c16_i32_13, %c0_i32_14 : i32
    %c1_i32 = arith.constant 1 : i32
    %34 = arith.select %33, %c1_i32, %c16_i32_13 : i32
    %35 = vector.broadcast %34 : i32 to vector<160x1xi32>
    %36 = arith.remsi %32, %35 : vector<160x1xi32>
    %c0_i32_15 = arith.constant 0 : i32
    %37 = vector.broadcast %c0_i32_15 : i32 to vector<160x1xi32>
    %38 = arith.cmpi ne, %36, %37 : vector<160x1xi32>
    %c0_i32_16 = arith.constant 0 : i32
    %39 = vector.broadcast %c0_i32_16 : i32 to vector<160x1xi32>
    %40 = arith.cmpi slt, %36, %39 : vector<160x1xi32>
    %c0_i32_17 = arith.constant 0 : i32
    %41 = arith.cmpi slt, %34, %c0_i32_17 : i32
    %42 = vector.broadcast %41 : i1 to vector<160x1xi1>
    %43 = vector.broadcast %42 : vector<160x1xi1> to vector<160x1xi1>
    %44 = arith.xori %40, %43 : vector<160x1xi1>
    %45 = arith.andi %44, %38 : vector<160x1xi1>
    %46 = vector.broadcast %34 : i32 to vector<160x1xi32>
    %47 = arith.addi %36, %46 : vector<160x1xi32>
    %48 = arith.select %45, %47, %36 : vector<160x1xi1>, vector<160x1xi32>
    %c1 = arith.constant 1 : index
    %c0_18 = arith.constant 0 : index
    %c0_19 = arith.constant 0 : index
    %49 = vector.load %arg5[%c1, %c0_18, %c0_19] : memref<3x12x8xbf16, #tpu.memory_space<vmem>>, vector<1x12x8xbf16>
    %50 = vector.shape_cast %49 : vector<1x12x8xbf16> to vector<12x8xbf16>
    %cst_20 = arith.constant dense<0.000000e+00> : vector<160x8xf32>
    %51 = tpu.matmul %31, %50, %cst_20 {dimension_numbers = #tpu.dot_dimension_numbers<[1], [0], [0], [1], [0, 0, 1, 1], [], []>} : vector<160x12xbf16>, vector<12x8xbf16>, vector<160x8xf32> -> vector<160x8xf32>
    %c0_21 = arith.constant 0 : index
    %c0_22 = arith.constant 0 : index
    %c0_23 = arith.constant 0 : index
    %52 = vector.load %arg5[%c0_21, %c0_22, %c0_23] : memref<3x12x8xbf16, #tpu.memory_space<vmem>>, vector<1x12x8xbf16>
    %53 = vector.shape_cast %52 : vector<1x12x8xbf16> to vector<12x8xbf16>
    %cst_24 = arith.constant dense<0.000000e+00> : vector<160x8xf32>
    %54 = tpu.matmul %31, %53, %cst_24 {dimension_numbers = #tpu.dot_dimension_numbers<[1], [0], [0], [1], [0, 0, 1, 1], [], []>} : vector<160x12xbf16>, vector<12x8xbf16>, vector<160x8xf32> -> vector<160x8xf32>
    %c1_i32_25 = arith.constant 1 : i32
    %55 = tpu.dynamic_rotate %54 by %c1_i32_25 dim 0 : vector<160x8xf32>, i32 -> vector<160x8xf32>
    %c0_i32_26 = arith.constant 0 : i32
    %56 = vector.broadcast %c0_i32_26 : i32 to vector<160x1xi32>
    %57 = arith.cmpi eq, %48, %56 : vector<160x1xi32>
    %cst_27 = arith.constant 0.000000e+00 : f32
    %58 = vector.shape_cast %57 : vector<160x1xi1> to vector<160x1xi1>
    %59 = vector.broadcast %58 : vector<160x1xi1> to vector<160x8xi1>
    %60 = vector.broadcast %cst_27 : f32 to vector<160x8xf32>
    %61 = arith.select %59, %60, %55 : vector<160x8xi1>, vector<160x8xf32>
    %62 = arith.addf %51, %61 : vector<160x8xf32>
    %c2 = arith.constant 2 : index
    %c0_28 = arith.constant 0 : index
    %c0_29 = arith.constant 0 : index
    %63 = vector.load %arg5[%c2, %c0_28, %c0_29] : memref<3x12x8xbf16, #tpu.memory_space<vmem>>, vector<1x12x8xbf16>
    %64 = vector.shape_cast %63 : vector<1x12x8xbf16> to vector<12x8xbf16>
    %cst_30 = arith.constant dense<0.000000e+00> : vector<160x8xf32>
    %65 = tpu.matmul %31, %64, %cst_30 {dimension_numbers = #tpu.dot_dimension_numbers<[1], [0], [0], [1], [0, 0, 1, 1], [], []>} : vector<160x12xbf16>, vector<12x8xbf16>, vector<160x8xf32> -> vector<160x8xf32>
    %c159_i32 = arith.constant 159 : i32
    %66 = tpu.dynamic_rotate %65 by %c159_i32 dim 0 : vector<160x8xf32>, i32 -> vector<160x8xf32>
    %c15_i32 = arith.constant 15 : i32
    %67 = vector.broadcast %c15_i32 : i32 to vector<160x1xi32>
    %68 = arith.cmpi eq, %48, %67 : vector<160x1xi32>
    %cst_31 = arith.constant 0.000000e+00 : f32
    %69 = vector.shape_cast %68 : vector<160x1xi1> to vector<160x1xi1>
    %70 = vector.broadcast %69 : vector<160x1xi1> to vector<160x8xi1>
    %71 = vector.broadcast %cst_31 : f32 to vector<160x8xf32>
    %72 = arith.select %70, %71, %66 : vector<160x8xi1>, vector<160x8xf32>
    %73 = arith.addf %62, %72 : vector<160x8xf32>
    %74 = vector.shape_cast %73 : vector<160x8xf32> to vector<10x16x8xf32>
    %c0_32 = arith.constant 0 : index
    %c0_33 = arith.constant 0 : index
    %75 = vector.load %arg6[%c0_32, %c0_33] : memref<1x8xf32, #tpu.memory_space<vmem>>, vector<1x8xf32>
    %76 = vector.shape_cast %75 : vector<1x8xf32> to vector<1x1x8xf32>
    %77 = vector.broadcast %76 : vector<1x1x8xf32> to vector<10x16x8xf32>
    %78 = arith.addf %74, %77 : vector<10x16x8xf32>
    %cst_34 = arith.constant 0.000000e+00 : f32
    %79 = vector.broadcast %cst_34 : f32 to vector<10x16x8xf32>
    %80 = arith.maximumf %78, %79 : vector<10x16x8xf32>
    %81 = tpu.iota {dimensions = array<i32: 0>} : vector<10x1x1xi32>
    %c1_i32_35 = arith.constant 1 : i32
    %82 = arith.subi %0, %c1_i32_35 : i32
    %83 = vector.broadcast %82 : i32 to vector<10x1x1xi32>
    %84 = arith.addi %81, %83 : vector<10x1x1xi32>
    %c0_i32_36 = arith.constant 0 : i32
    %85 = vector.broadcast %c0_i32_36 : i32 to vector<10x1x1xi32>
    %86 = arith.cmpi sge, %84, %85 : vector<10x1x1xi32>
    %c16_i32_37 = arith.constant 16 : i32
    %87 = vector.broadcast %c16_i32_37 : i32 to vector<10x1x1xi32>
    %88 = arith.cmpi slt, %84, %87 : vector<10x1x1xi32>
    %89 = arith.andi %86, %88 : vector<10x1x1xi1>
    %cst_38 = arith.constant 0.000000e+00 : f32
    %90 = vector.shape_cast %89 : vector<10x1x1xi1> to vector<10x1x1xi1>
    %91 = vector.broadcast %90 : vector<10x1x1xi1> to vector<10x16x8xi1>
    %92 = vector.broadcast %cst_38 : f32 to vector<10x16x8xf32>
    %93 = arith.select %91, %80, %92 : vector<10x16x8xi1>, vector<10x16x8xf32>
    %94 = arith.truncf %93 : vector<10x16x8xf32> to vector<10x16x8xbf16>
    %95 = vector.shape_cast %94 : vector<10x16x8xbf16> to vector<160x8xbf16>
    %96 = vector.extract_strided_slice %95 {offsets = [0, 0], sizes = [128, 8], strides = [1, 1]} : vector<160x8xbf16> to vector<128x8xbf16>
    %97 = vector.extract_strided_slice %95 {offsets = [16, 0], sizes = [128, 8], strides = [1, 1]} : vector<160x8xbf16> to vector<128x8xbf16>
    %98 = vector.extract_strided_slice %95 {offsets = [32, 0], sizes = [128, 8], strides = [1, 1]} : vector<160x8xbf16> to vector<128x8xbf16>
    %99 = tpu.concatenate %96, %97, %98 in 1 : vector<128x8xbf16>, vector<128x8xbf16>, vector<128x8xbf16> -> vector<128x24xbf16>
    %100 = tpu.iota {dimensions = array<i32: 0>} : vector<128x1xi32>
    %c16_i32_39 = arith.constant 16 : i32
    %c0_i32_40 = arith.constant 0 : i32
    %101 = arith.cmpi eq, %c16_i32_39, %c0_i32_40 : i32
    %c1_i32_41 = arith.constant 1 : i32
    %102 = arith.select %101, %c1_i32_41, %c16_i32_39 : i32
    %103 = vector.broadcast %102 : i32 to vector<128x1xi32>
    %104 = arith.remsi %100, %103 : vector<128x1xi32>
    %c0_i32_42 = arith.constant 0 : i32
    %105 = vector.broadcast %c0_i32_42 : i32 to vector<128x1xi32>
    %106 = arith.cmpi ne, %104, %105 : vector<128x1xi32>
    %c0_i32_43 = arith.constant 0 : i32
    %107 = vector.broadcast %c0_i32_43 : i32 to vector<128x1xi32>
    %108 = arith.cmpi slt, %104, %107 : vector<128x1xi32>
    %c0_i32_44 = arith.constant 0 : i32
    %109 = arith.cmpi slt, %102, %c0_i32_44 : i32
    %110 = vector.broadcast %109 : i1 to vector<128x1xi1>
    %111 = vector.broadcast %110 : vector<128x1xi1> to vector<128x1xi1>
    %112 = arith.xori %108, %111 : vector<128x1xi1>
    %113 = arith.andi %112, %106 : vector<128x1xi1>
    %114 = vector.broadcast %102 : i32 to vector<128x1xi32>
    %115 = arith.addi %104, %114 : vector<128x1xi32>
    %116 = arith.select %113, %115, %104 : vector<128x1xi1>, vector<128x1xi32>
    %c1_45 = arith.constant 1 : index
    %c0_46 = arith.constant 0 : index
    %c0_47 = arith.constant 0 : index
    %117 = vector.load %arg7[%c1_45, %c0_46, %c0_47] : memref<3x24x8xbf16, #tpu.memory_space<vmem>>, vector<1x24x8xbf16>
    %118 = vector.shape_cast %117 : vector<1x24x8xbf16> to vector<24x8xbf16>
    %cst_48 = arith.constant dense<0.000000e+00> : vector<128x8xf32>
    %119 = tpu.matmul %99, %118, %cst_48 {dimension_numbers = #tpu.dot_dimension_numbers<[1], [0], [0], [1], [0, 0, 1, 1], [], []>} : vector<128x24xbf16>, vector<24x8xbf16>, vector<128x8xf32> -> vector<128x8xf32>
    %c0_49 = arith.constant 0 : index
    %c0_50 = arith.constant 0 : index
    %c0_51 = arith.constant 0 : index
    %120 = vector.load %arg7[%c0_49, %c0_50, %c0_51] : memref<3x24x8xbf16, #tpu.memory_space<vmem>>, vector<1x24x8xbf16>
    %121 = vector.shape_cast %120 : vector<1x24x8xbf16> to vector<24x8xbf16>
    %cst_52 = arith.constant dense<0.000000e+00> : vector<128x8xf32>
    %122 = tpu.matmul %99, %121, %cst_52 {dimension_numbers = #tpu.dot_dimension_numbers<[1], [0], [0], [1], [0, 0, 1, 1], [], []>} : vector<128x24xbf16>, vector<24x8xbf16>, vector<128x8xf32> -> vector<128x8xf32>
    %c1_i32_53 = arith.constant 1 : i32
    %123 = tpu.dynamic_rotate %122 by %c1_i32_53 dim 0 : vector<128x8xf32>, i32 -> vector<128x8xf32>
    %c0_i32_54 = arith.constant 0 : i32
    %124 = vector.broadcast %c0_i32_54 : i32 to vector<128x1xi32>
    %125 = arith.cmpi eq, %116, %124 : vector<128x1xi32>
    %cst_55 = arith.constant 0.000000e+00 : f32
    %126 = vector.shape_cast %125 : vector<128x1xi1> to vector<128x1xi1>
    %127 = vector.broadcast %126 : vector<128x1xi1> to vector<128x8xi1>
    %128 = vector.broadcast %cst_55 : f32 to vector<128x8xf32>
    %129 = arith.select %127, %128, %123 : vector<128x8xi1>, vector<128x8xf32>
    %130 = arith.addf %119, %129 : vector<128x8xf32>
    %c2_56 = arith.constant 2 : index
    %c0_57 = arith.constant 0 : index
    %c0_58 = arith.constant 0 : index
    %131 = vector.load %arg7[%c2_56, %c0_57, %c0_58] : memref<3x24x8xbf16, #tpu.memory_space<vmem>>, vector<1x24x8xbf16>
    %132 = vector.shape_cast %131 : vector<1x24x8xbf16> to vector<24x8xbf16>
    %cst_59 = arith.constant dense<0.000000e+00> : vector<128x8xf32>
    %133 = tpu.matmul %99, %132, %cst_59 {dimension_numbers = #tpu.dot_dimension_numbers<[1], [0], [0], [1], [0, 0, 1, 1], [], []>} : vector<128x24xbf16>, vector<24x8xbf16>, vector<128x8xf32> -> vector<128x8xf32>
    %c127_i32 = arith.constant 127 : i32
    %134 = tpu.dynamic_rotate %133 by %c127_i32 dim 0 : vector<128x8xf32>, i32 -> vector<128x8xf32>
    %c15_i32_60 = arith.constant 15 : i32
    %135 = vector.broadcast %c15_i32_60 : i32 to vector<128x1xi32>
    %136 = arith.cmpi eq, %116, %135 : vector<128x1xi32>
    %cst_61 = arith.constant 0.000000e+00 : f32
    %137 = vector.shape_cast %136 : vector<128x1xi1> to vector<128x1xi1>
    %138 = vector.broadcast %137 : vector<128x1xi1> to vector<128x8xi1>
    %139 = vector.broadcast %cst_61 : f32 to vector<128x8xf32>
    %140 = arith.select %138, %139, %134 : vector<128x8xi1>, vector<128x8xf32>
    %141 = arith.addf %130, %140 : vector<128x8xf32>
    %142 = vector.shape_cast %141 : vector<128x8xf32> to vector<8x16x8xf32>
    %c0_62 = arith.constant 0 : index
    %c0_63 = arith.constant 0 : index
    %143 = vector.load %arg8[%c0_62, %c0_63] : memref<1x8xf32, #tpu.memory_space<vmem>>, vector<1x8xf32>
    %144 = vector.shape_cast %143 : vector<1x8xf32> to vector<1x1x8xf32>
    %145 = vector.broadcast %144 : vector<1x1x8xf32> to vector<8x16x8xf32>
    %146 = arith.addf %142, %145 : vector<8x16x8xf32>
    %cst_64 = arith.constant 0.000000e+00 : f32
    %147 = vector.broadcast %cst_64 : f32 to vector<8x16x8xf32>
    %148 = arith.maximumf %146, %147 : vector<8x16x8xf32>
    %149 = arith.truncf %148 : vector<8x16x8xf32> to vector<8x16x8xbf16>
    %c0_65 = arith.constant 0 : index
    %c0_66 = arith.constant 0 : index
    %c0_67 = arith.constant 0 : index
    %c0_68 = arith.constant 0 : index
    %150 = vector.load %arg9[%c0_65, %c0_66, %c0_67, %c0_68] : memref<1x8x16x8xbf16, #tpu.memory_space<vmem>>, vector<1x8x16x8xbf16>
    %151 = vector.shape_cast %150 : vector<1x8x16x8xbf16> to vector<8x16x8xbf16>
    %152 = vector.shape_cast %149 : vector<8x16x8xbf16> to vector<1x8x16x8xbf16>
    tpu.vector_store %arg9[%c0_65, %c0_66, %c0_67, %c0_68], %152 {strides = array<i32>} : memref<1x8x16x8xbf16, #tpu.memory_space<vmem>>, vector<1x8x16x8xbf16>,
    return
  }
  func.func @transform_0(%arg0: i32, %arg1: i32) -> (i32, i32, i32, i32) {
    %c4_i32 = arith.constant 4 : i32
    %0 = arith.muli %arg1, %c4_i32 : i32
    %c1_i32 = arith.constant 1 : i32
    %1 = arith.subi %0, %c1_i32 : i32
    %c0_i32 = arith.constant 0 : i32
    %2 = arith.maxsi %1, %c0_i32 : i32
    %c0_i32_0 = arith.constant 0 : i32
    %c0_i32_1 = arith.constant 0 : i32
    %c0_i32_2 = arith.constant 0 : i32
    return %arg0, %2, %c0_i32_0, %c0_i32_1 : i32, i32, i32, i32
  }
  func.func @transform_1(%arg0: i32, %arg1: i32) -> (i32, i32, i32, i32) {
    %c0_i32 = arith.constant 0 : i32
    %c0_i32_0 = arith.constant 0 : i32
    %c0_i32_1 = arith.constant 0 : i32
    return %arg0, %arg1, %c0_i32, %c0_i32_0 : i32, i32, i32, i32
  }
  func.func @transform_2(%arg0: i32, %arg1: i32) -> (i32, i32, i32, i32) {
    %c1_i32 = arith.constant 1 : i32
    %0 = arith.addi %arg1, %c1_i32 : i32
    %c4_i32 = arith.constant 4 : i32
    %1 = arith.muli %0, %c4_i32 : i32
    %c7_i32 = arith.constant 7 : i32
    %2 = arith.minsi %1, %c7_i32 : i32
    %c0_i32 = arith.constant 0 : i32
    %c0_i32_0 = arith.constant 0 : i32
    %c0_i32_1 = arith.constant 0 : i32
    return %arg0, %2, %c0_i32, %c0_i32_0 : i32, i32, i32, i32
  }
  func.func @transform_3(%arg0: i32, %arg1: i32) -> (i32, i32, i32) {
    %c0_i32 = arith.constant 0 : i32
    %c0_i32_0 = arith.constant 0 : i32
    %c0_i32_1 = arith.constant 0 : i32
    %c0_i32_2 = arith.constant 0 : i32
    return %c0_i32, %c0_i32_0, %c0_i32_1 : i32, i32, i32
  }
  func.func @transform_4(%arg0: i32, %arg1: i32) -> (i32, i32) {
    %c0_i32 = arith.constant 0 : i32
    %c0_i32_0 = arith.constant 0 : i32
    %c0_i32_1 = arith.constant 0 : i32
    return %c0_i32, %c0_i32_0 : i32, i32
  }
  func.func @transform_5(%arg0: i32, %arg1: i32) -> (i32, i32, i32) {
    %c0_i32 = arith.constant 0 : i32
    %c0_i32_0 = arith.constant 0 : i32
    %c0_i32_1 = arith.constant 0 : i32
    %c0_i32_2 = arith.constant 0 : i32
    return %c0_i32, %c0_i32_0, %c0_i32_1 : i32, i32, i32
  }
  func.func @transform_6(%arg0: i32, %arg1: i32) -> (i32, i32) {
    %c0_i32 = arith.constant 0 : i32
    %c0_i32_0 = arith.constant 0 : i32
    %c0_i32_1 = arith.constant 0 : i32
    return %c0_i32, %c0_i32_0 : i32, i32
  }
  func.func @transform_7(%arg0: i32, %arg1: i32) -> (i32, i32, i32, i32) {
    %c0_i32 = arith.constant 0 : i32
    %c0_i32_0 = arith.constant 0 : i32
    %c0_i32_1 = arith.constant 0 : i32
    return %arg0, %arg1, %c0_i32, %c0_i32_0 : i32, i32, i32, i32
  }
}

</mosaic_0001>

<bundles_post_ra>
// kernel: double_conv.1
= control target key start
LH: loop header
LB: loop body
LE: loop exit
PB: predicated region body
PF: predicated region fallthrough
CT: control target
= control target key end

     0   :  { %s3024_s24 = smov 0   ;;  %s3026_s25 = smov 0   ;;  %s4122_s0 = inlined_call_operand.vmem [shape: bf16[2,16,16,4], index: 0, kind: input, shape index: {}, may-alias: {0,1,2}]   ;;  %s4123_s1 = inlined_call_operand.vmem [shape: bf16[2,16,16,4], index: 1, kind: input, shape index: {}, may-alias: {0,1,2}]   ;;  %s4124_s2 = inlined_call_operand.vmem [shape: bf16[2,16,16,4], index: 2, kind: input, shape index: {}, may-alias: {0,1,2}]   ;;  %s4125_s3 = inlined_call_operand.vmem [shape: bf16[3,12,8], index: 3, kind: input, shape index: {}]   ;;  %s4126_s4 = inlined_call_operand.vmem [shape: f32[1,8], index: 4, kind: input, shape index: {}]   ;;  %s4127_s5 = inlined_call_operand.vmem [shape: bf16[3,24,8], index: 5, kind: input, shape index: {}]   ;;  %s4128_s6 = inlined_call_operand.vmem [shape: f32[1,8], index: 6, kind: input, shape index: {}]   ;;  %s4129_s7 = inlined_call_operand.vmem [shape: bf16[2,16,16,8], index: 7, kind: output, shape index: {}]  }
   0x1   :  { %s3028_s26 = smov 0   ;;  %s3030_s27 = smov 0  }
   0x2   :  { %s3032_s28 = smov 0  }
   0x3 LB: > { %s26_s29 = sadd.s32 1, %s2971_s26  ;;  %s29_s30 = sadd.s32 1, %s2975_s27  ;;  %s2979_s28 = sphi %s3032_s28, %s17_s28   ;;  %s2975_s27 = sphi %s3030_s27, %s4280_s27   ;;  %s2971_s26 = sphi %s3028_s26, %s4279_s26   ;;  %s2967_s25 = sphi %s3026_s25, %s4278_s25   ;;  %s2963_s24 = sphi %s3024_s24, %s4277_s24  }
   0x4   : > { %p27_p0 = scmp.ge.s32.totalorder %s26_s29, 2  ;;  %p2536_p1 = scmp.ge.s32.totalorder %s2979_s28, 1 }
   0x5   : > { %p327_p2 = scmp.lt.s32.totalorder %s2979_s28, 5 }
   0x6   : > { %s4282_s29 = smov (%p27_p0, %s26_s29), 0  ;;  %s4284_s30 = smov (!%p27_p0, %s29_s30), %s2975_s27 }
   0x7   : > { %p328_p3 = pnand %p2536_p1, %p327_p2  ;;  %p31_p4 = scmp.ge.s32.totalorder %s4284_s30, 2 }
   0x8   : > { %p402_p5 = scmp.lt.s32.totalorder (!%p328_p3), %s2967_s25, 1  ;;  %s3054_s8 = sshll.u32 (!%p328_p3), %s2963_s24, 3  ;;  %vm953_vm0 = vcmask (!%p328_p3), 1045504   ;;  %v2932_v5 = vld [vmem:[%s4125_s3] sm:$0x3f] (!%p328_p3)   ;;  %vm609_vm5 = vcmask (!%p328_p3), 31744  }
   0x9   : > { %s4286_s30 = smov (%p31_p4, %s4284_s30), 0  ;;  %331 = sbr.rel (%p328_p3) target bundleno = 836 (0x344), region = 48 }
   0xa   : > { %p419_p6 = scmp.lt.s32.totalorder (!%p328_p3), %s3054_s8, 15  ;;  %s2537_s11 = sshll.u32 (!%p328_p3), %s2963_s24, 2  ;;  %v2933_v7 = vld [vmem:[%s4125_s3 + $0x8] sm:$0x3f] (!%p328_p3)   ;;  %v2934_v8 = vld [vmem:[%s4125_s3 + $0x10] sm:$0x3f] (!%p328_p3)   ;;  %2875 = vmatprep.subr.msk.bf16.mxu0 (!%p328_p3), %vm953_vm0, %v2932_v5 }
   0xb   : > { %s2538_s13 = sadd.s32 (!%p328_p3), 4294967295, %s2537_s11  ;;  %s2669_s16 = sadd.s32 (!%p328_p3), 4, %s2537_s11  ;;  %2876 = vmatprep.subr.msk.bf16.mxu1 (!%p328_p3), %vm953_vm0, %v2933_v7  ;;  %v955_v20 = vsel (!%p328_p3), %vm953_vm0, %v2932_v5, 0  ;;  %v1197_v21 = vsel (!%p328_p3), %vm953_vm0, %v2933_v7, 0  ;;  %v1321_v22 = vsel (!%p328_p3), %vm953_vm0, %v2934_v8, 0  ;;  %vm4132_vm6 = vcmask (!%p328_p3), 64512  }
   0xc   : > { %p399_p7 = scmp.gt.s32.totalorder (!%p328_p3), %s2538_s13, 0  ;;  %p429_p8 = scmp.lt.s32.totalorder (!%p328_p3), %s2669_s16, 7  ;;  %2750 = vmatpush3.bf16.msra.mxu0 (!%p328_p3), %v955_v20  ;;  %2772 = vmatpush3.bf16.msra.mxu1 (!%p328_p3), %v1197_v21  ;;  %vm932_vm7 = vcmask (!%p328_p3), 97280   ;;  %vm4133_vm8 = vcmask (!%p328_p3), 1043456  }
   0xd   : > { %s2557_s20 = sadd.s32 (!%p328_p3), 4294967294, %s3054_s8  ;;  %s2981_s21 = smov (!%p328_p3), 8   ;;  %2877 = vmatprep.subr.msk.bf16.mxu0 (!%p328_p3), %vm953_vm0, %v2934_v8 }
   0xe   : > { %v484_v1 = vstv (!%p328_p3), %s2557_s20 }
   0xf   : > { %v485_v3 = vadd.s32 (!%p328_p3), 1, %v484_v1  ;;  %vm486_vm1 = vcmp.ge.s32.totalorder (!%p328_p3), %v484_v1, 0 }
  0x10   : > { %s4288_s25 = smov (!%p402_p5, %s2967_s25), 1  ;;  %s4290_s13 = smov (!%p399_p7, %s2538_s13), 0 }
  0x11   : > { %s420_s9 = scalar_select %p419_p6, %s3054_s8, 15  ;;  %vm487_vm2 = vcmp.ge.s32.totalorder %v485_v3, 0 }
  0x12   : > { %s3058_s10 = sshll.u32 %s4288_s25, 5  ;;  %s2539_s22 = sshll.u32 %s4290_s13, 1 }
  0x13   : > { %s2544_s12 = sshll.u32 %s420_s9, 1  ;;  %p404_p9 = scmp.lt.s32.totalorder %s2539_s22, 15 }
  0x14   : > { %s3061_s14 = sadd.s32 %s2544_s12, %s3058_s10  ;;  %s4292_s16 = smov (!%p429_p8, %s2669_s16), 7 }
  0x15   : > { %s4130_s15 = sshll.u32 %s3061_s14, 2  ;;  %s4294_s22 = smov (!%p404_p9, %s2539_s22), 15 }
  0x16   : > { %s3069_s19 = scalar_lea.vmem %s4123_s1, %s4130_s15  ;;  %s2548_s23 = sshll.u32 %s4292_s16, 1 }
  0x17   : > { %v3072_v0 = vld [vmem:[%s3069_s19] sm:$0xff]   ;;  %v3078_v2 = vld [vmem:[%s3069_s19 + $0x8] sm:$0xff]   ;;  %v3083_v4 = vld [vmem:[%s3069_s19 + $0x10] sm:$0xff]   ;;  %s2540_s24 = sshll.u32 %s4294_s22, 1  ;;  %p3086_p10 = scmp.lt.s32.totalorder %s2548_s23, 15 }
  0x18   : > { %589 = vrot.lane.b32.xlu1 %v3072_v0, %s2981_s21  ;;  %s408_s25 = sadd.s32 %s3058_s10, %s2540_s24  ;;  %s2982_s16 = smov 4   ;;  %v3099_v6 = vld [vmem:[%s3069_s19 + $0x18] sm:$0xff]   ;;  %v3118_v18 = vld [vmem:[%s3069_s19 + $0x20] sm:$0xff]   ;;  %v3130_v23 = vld [vmem:[%s3069_s19 + $0x28] sm:$0xff]  }
  0x19   : > { %s2542_s11 = sshll.u32 %s408_s25, 2  ;;  %s4296_s23 = smov (!%p3086_p10, %s2548_s23), 15  ;;  %v3141_v25 = vld [vmem:[%s3069_s19 + $0x30] sm:$0xff]   ;;  %v3148_v29 = vld [vmem:[%s3069_s19 + $0x38] sm:$0xff]  }
  0x1a   : > { %s410_s20 = scalar_lea.vmem %s4122_s0, %s2542_s11  ;;  %s2549_s15 = sshll.u32 %s4296_s23, 1 }
  0x1b   : > { %v461_v9 = vld [vmem:[%s410_s20 + $0x8] sm:$0xf]  ;;  %v462_v10 = vld [vmem:[%s410_s20 + $0xc] sm:$0xf]  ;;  %v459_v11 = vld [vmem:[%s410_s20] sm:$0xf]  ;;  %s438_s9 = sadd.s32 %s2549_s15, %s3058_s10 }
  0x1c   : > { %591 = vrot.lane.b32.xlu1 %v3078_v2, %s2981_s21  ;;  %v494_v12 = vsel %vm487_vm2, %v461_v9, 0  ;;  %v495_v13 = vsel %vm487_vm2, %v462_v10, 0  ;;  %v460_v14 = vld [vmem:[%s410_s20 + $0x4] sm:$0xf]  ;;  %v492_v15 = vsel %vm486_vm1, %v459_v11, 0  ;;  %s2551_s23 = sshll.u32 %s438_s9, 2 }
  0x1d   : > { %v3112_v16 = vcombine.low %v494_v12, %v495_v13  ;;  %v493_v17 = vsel %vm486_vm1, %v460_v14, 0  ;;  %s496_s11 = sadd.s32 8, %s3054_s8  ;;  %s440_s17 = scalar_lea.vmem %s4124_s2, %s2551_s23  ;;  %v2935_v14 = vld [vmem:[%s4127_s5] sm:$0xff]  }
  0x1e   : > { %v2558_v19 = vcombine.low %v492_v15, %v493_v17  ;;  %v497_v24 = vstv %s496_s11  ;;  %v479_v26 = vld [vmem:[%s440_s17] sm:$0xf]  ;;  %v480_v27 = vld [vmem:[%s440_s17 + $0x4] sm:$0xf]  ;;  %v481_v32 = vld [vmem:[%s440_s17 + $0x8] sm:$0xf]  ;;  %2815 = vmatprep.subr.bf16.mxu1 %v2935_v14 }
  0x1f   : > { %564 = vrot.lane.b32.xlu0 %v3112_v16, %s2982_s16  ;;  %vm499_vm3 = vcmp.lt.s32.totalorder %v497_v24, 16  ;;  %v498_v28 = vadd.s32 1, %v497_v24  ;;  %v482_v33 = vld [vmem:[%s440_s17 + $0xc] sm:$0xf]  ;;  %v2936_v15 = vld [vmem:[%s4127_s5 + $0x8] ss:$0 sps:$4 sm:$0xff]  }
  0x20   : > { %570 = vrot.lane.b32.xlu1 %v3083_v4, %s2982_s16  ;;  %v505_v30 = vsel %vm499_vm3, %v479_v26, 0  ;;  %v506_v31 = vsel %vm499_vm3, %v480_v27, 0  ;;  %v1832_v17 = vsel %vm4133_vm8, %v2936_v15, 0  ;;  %s2608_s24 = sadd.s32 4294967295, %s3054_s8  ;;  %s2983_s12 = smov 16  }
  0x21   : > { %vm500_vm4 = vcmp.lt.s32.totalorder %v498_v28, 16  ;;  %v2568_v34 = vcombine.low %v505_v30, %v506_v31  ;;  %s4268_s19 = sshll.u32 %s3061_s14, 2 }
  0x22   : > { %v507_v35 = vsel %vm500_vm4, %v481_v32, 0  ;;  %v508_v36 = vsel %vm500_vm4, %v482_v33, 0 }
  0x23   : > { %566 = vrot.lane.b32.xlu0 %v3072_v0, %s2982_s16  ;;  %v2569_v37 = vcombine.low %v507_v35, %v508_v36 }
  0x24   : > { %595 = vrot.lane.b32.xlu1 %v3099_v6, %s2981_s21 }
  0x27   : > { %568 = vrot.lane.b32.xlu0 %v3078_v2, %s2982_s16 }
  0x28   : > { %574 = vrot.lane.b32.xlu1 %v3118_v18, %s2982_s16 }
  0x2b   : > { %593 = vrot.lane.b32.xlu0 %v3083_v4, %s2981_s21 }
  0x2c   : > { %599 = vrot.lane.b32.xlu1 %v3130_v23, %s2981_s21 }
  0x2f   : > { %572 = vrot.lane.b32.xlu0 %v3099_v6, %s2982_s16 }
  0x30   : > { %578 = vrot.lane.b32.xlu1 %v3141_v25, %s2982_s16 }
  0x33   : > { %597 = vrot.lane.b32.xlu0 %v3118_v18, %s2981_s21 }
  0x34   : > { %603 = vrot.lane.b32.xlu1 %v3148_v29, %s2981_s21 }
  0x37   : > { %576 = vrot.lane.b32.xlu0 %v3130_v23, %s2982_s16 }
  0x38   : > { %582 = vrot.lane.b32.xlu1 %v2568_v34, %s2982_s16 }
  0x3b   : > { %601 = vrot.lane.b32.xlu0 %v3141_v25, %s2981_s21 }
  0x3c   : > { %607 = vrot.lane.b32.xlu1 %v2569_v37, %s2981_s21 }
  0x3f   : > { %580 = vrot.lane.b32.xlu0 %v3148_v29, %s2982_s16  ;;  %s4012_s16 = scalar_lea.vmem %s4129_s7, %s4268_s19 }
  0x43   : > { %605 = vrot.lane.b32.xlu0 %v2568_v34, %s2981_s21 }
  0x8a   : > { %v590_v38 = vpop.permute.xlu1 %589 }
  0x8e   : > { %v592_v39 = vpop.permute.xlu1 %591 }
  0x91   : > { %v565_v42 = vpop.permute.xlu0 %564 }
  0x92   : > { %v571_v40 = vpop.permute.xlu1 %570  ;;  %v612_v43 = vsel %vm609_vm5, %v2558_v19, %v565_v42 }
  0x93   : > { %v642_v44 = vsel %vm4132_vm6, %v612_v43, %v590_v38  ;;  %v621_v50 = vsel %vm609_vm5, %v3078_v2, %v571_v40 }
  0x94   : > { %2751 = vmatprep.mubr.msk.bf16.mxu0 %vm932_vm7, %v642_v44  ;;  %2773 = vmatprep.mubr.msk.bf16.mxu1 %vm932_vm7, %v642_v44 }
  0x95   : > { %v567_v45 = vpop.permute.xlu0 %566 }
  0x96   : > { %v596_v41 = vpop.permute.xlu1 %595  ;;  %v615_v46 = vsel %vm609_vm5, %v3112_v16, %v567_v45  ;;  %v2937_v16 = vld [vmem:[%s4127_s5 + $0x18] sm:$0xff]  }
  0x97   : > { %v644_v48 = vsel %vm4132_vm6, %v615_v46, %v592_v39  ;;  %v648_v55 = vsel %vm4132_vm6, %v621_v50, %v596_v41 }
  0x98   : > { %2752 = vmatmul.mubr.msk.bf16.vlgmr.msra.gmra.mrb[0].mxu0 %vm932_vm7, %v644_v48  ;;  %2774 = vmatmul.mubr.msk.bf16.vlgmr.msra.gmra.mrb[0].mxu1 %vm932_vm7, %v644_v48 }
  0x99   : > { %2794 = vmatpush3.bf16.msra.mxu0 %v1321_v22  ;;  %v569_v49 = vpop.permute.xlu0 %568  ;;  %2816 = vmatpush3.bf16.msra.mxu1 %v2935_v14 }
  0x9a   : > { %v575_v47 = vpop.permute.xlu1 %574  ;;  %v618_v52 = vsel %vm609_vm5, %v3072_v0, %v569_v49  ;;  %2855 = vmatprep.subr.bf16.mxu0 %v2937_v16  ;;  %2878 = vmatprep.subr.msk.bf16.mxu1 %vm4133_vm8, %v2936_v15 }
  0x9b   : > { %v627_v58 = vsel %vm609_vm5, %v3099_v6, %v575_v47 }
  0x9d   : > { %v594_v53 = vpop.permute.xlu0 %593  ;;  %2818 = vmatpush3.bf16.msra.mxu1 %v1832_v17 }
  0x9e   : > { %v600_v51 = vpop.permute.xlu1 %599  ;;  %v646_v54 = vsel %vm4132_vm6, %v618_v52, %v594_v53 }
  0x9f   : > { %2755 = vmatprep.mubr.msk.bf16.mxu0 %vm932_vm7, %v646_v54  ;;  %2777 = vmatprep.mubr.msk.bf16.mxu1 %vm932_vm7, %v646_v54  ;;  %v652_v62 = vsel %vm4132_vm6, %v627_v58, %v600_v51 }
  0xa0   : > { %2756 = vmatmul.mubr.msk.bf16.gmra.mrb[4].mxu0 %vm932_vm7, %v648_v55  ;;  %2778 = vmatmul.mubr.msk.bf16.gmra.mrb[4].mxu1 %vm932_vm7, %v648_v55 }
  0xa1   : > { %v573_v56 = vpop.permute.xlu0 %572 }
  0xa2   : > { %v579_v57 = vpop.permute.xlu1 %578  ;;  %v624_v59 = vsel %vm609_vm5, %v3083_v4, %v573_v56 }
  0xa3   : > { %v633_v1 = vsel %vm609_vm5, %v3130_v23, %v579_v57 }
  0xa5   : > { %v598_v60 = vpop.permute.xlu0 %597 }
  0xa6   : > { %v650_v61 = vsel %vm4132_vm6, %v624_v59, %v598_v60  ;;  %v604_v63 = vpop.permute.xlu1 %603 }
  0xa7   : > { %2759 = vmatprep.mubr.msk.bf16.mxu0 %vm932_vm7, %v650_v61  ;;  %2781 = vmatprep.mubr.msk.bf16.mxu1 %vm932_vm7, %v650_v61  ;;  %v656_v6 = vsel %vm4132_vm6, %v633_v1, %v604_v63 }
  0xa8   : > { %2760 = vmatmul.mubr.msk.bf16.gmra.mrb[8].mxu0 %vm932_vm7, %v652_v62  ;;  %2782 = vmatmul.mubr.msk.bf16.gmra.mrb[8].mxu1 %vm932_vm7, %v652_v62 }
  0xa9   : > { %v577_v0 = vpop.permute.xlu0 %576 }
  0xaa   : > { %v630_v2 = vsel %vm609_vm5, %v3118_v18, %v577_v0  ;;  %v583_v5 = vpop.permute.xlu1 %582  ;;  %v661_v18 = vlaneseq }
  0xab   : > { %v639_v8 = vsel %vm609_vm5, %v3148_v29, %v583_v5 }
  0xac   : > { %v3237_v19 = vshrl.u32 %v661_v18, 7 }
  0xad   : > { %v602_v3 = vpop.permute.xlu0 %601 }
  0xae   : > { %v654_v4 = vsel %vm4132_vm6, %v630_v2, %v602_v3  ;;  %v608_v9 = vpop.permute.xlu1 %607  ;;  %v664_v20 = vadd.s32 16, %v3237_v19  ;;  %vm4131_vm9 = vcmp.lt.s32.totalorder %v3237_v19, 1  ;;  %v666_v28 = vadd.s32 32, %v3237_v19 }
  0xaf   : > { %2763 = vmatprep.mubr.msk.bf16.mxu0 %vm932_vm7, %v654_v4  ;;  %2785 = vmatprep.mubr.msk.bf16.mxu1 %vm932_vm7, %v654_v4  ;;  %v660_v13 = vsel %vm4132_vm6, %v639_v8, %v608_v9  ;;  %v668_v36 = vadd.s32 48, %v3237_v19  ;;  %v670_v50 = vadd.s32 64, %v3237_v19  ;;  %v674_v14 = vadd.s32 96, %v3237_v19 }
  0xb0   : > { %2764 = vmatmul.mubr.msk.bf16.gmra.mrb[12].mxu0 %vm932_vm7, %v656_v6  ;;  %2786 = vmatmul.mubr.msk.bf16.gmra.mrb[12].mxu1 %vm932_vm7, %v656_v6  ;;  %v700_v23 = vand.u32 15, %v664_v20  ;;  %v714_v41 = vand.u32 15, %v666_v28  ;;  %v4153_v28 = vmov 0  ;;  %vm4139_vm4 = vcmp.lt.s32.totalorder %v3237_v19, 7 }
  0xb1   : > { %v581_v7 = vpop.permute.xlu0 %580  ;;  %v728_v47 = vand.u32 15, %v668_v36  ;;  %v742_v1 = vand.u32 15, %v670_v50  ;;  %v678_v50 = vadd.s32 128, %v3237_v19 }
  0xb2   : > { %v636_v10 = vsel %vm609_vm5, %v3141_v25, %v581_v7  ;;  %vm3247_vm10 = vcmp.eq.s32.totalorder %v700_v23, 0  ;;  %vm3269_vm11 = vcmp.eq.s32.totalorder %v714_v41, 0 }
  0xb3   : > { %vm3275_vm12 = vcmp.eq.s32.totalorder %v728_v47, 0  ;;  %vm3299_vm13 = vcmp.eq.s32.totalorder %v742_v1, 0 }
  0xb5   : > { %v606_v11 = vpop.permute.xlu0 %605 }
  0xb6   : > { %v658_v12 = vsel %vm4132_vm6, %v636_v10, %v606_v11 }
  0xb7   : > { %2767 = vmatprep.mubr.msk.bf16.mxu0 %vm932_vm7, %v658_v12  ;;  %2789 = vmatprep.mubr.msk.bf16.mxu1 %vm932_vm7, %v658_v12 }
  0xb8   : > { %2768 = vmatmul.mubr.msk.bf16.gmra.mrb[16].mxu0 %vm932_vm7, %v660_v13  ;;  %2790 = vmatmul.mubr.msk.bf16.gmra.mrb[16].mxu1 %vm932_vm7, %v660_v13 }
  0xb9   : > { %2795 = vmatprep.mubr.msk.bf16.mxu0 %vm932_vm7, %v642_v44 }
  0xc0   : > { %2796 = vmatmul.mubr.msk.bf16.vlgmr.msra.gmra.mrb[20].mxu0 %vm932_vm7, %v644_v48 }
  0xc1   : > { %2799 = vmatprep.mubr.msk.bf16.mxu0 %vm932_vm7, %v646_v54  ;;  %2856 = vmatpush3.bf16.msra.mxu0 %v2937_v16  ;;  %v4151_v16 = vmov 0 }
  0xc2   : > { %v4152_v16 = vsel %vm3299_vm13, 4294967295, %v4151_v16 }
  0xc8   : > { %2800 = vmatmul.mubr.msk.bf16.gmra.mrb[24].mxu0 %vm932_vm7, %v648_v55 }
  0xc9   : > { %2803 = vmatprep.mubr.msk.bf16.mxu0 %vm932_vm7, %v650_v61 }
  0xd0   : > { %2804 = vmatmul.mubr.msk.bf16.gmra.mrb[28].mxu0 %vm932_vm7, %v652_v62  ;;  %v672_v62 = vadd.s32 80, %v3237_v19 }
  0xd1   : > { %2807 = vmatprep.mubr.msk.bf16.mxu0 %vm932_vm7, %v654_v4 }
  0xd2   : > { %v756_v11 = vand.u32 15, %v672_v62 }
  0xd4   : > { %vm3305_vm14 = vcmp.eq.s32.totalorder %v756_v11, 0 }
  0xd5   : > { %v4154_v28 = vsel %vm3305_vm14, 4294967295, %v4153_v28 }
  0xd8   : > { %2808 = vmatmul.mubr.msk.bf16.gmra.mrb[32].mxu0 %vm932_vm7, %v656_v6 }
  0xd9   : > { %2811 = vmatprep.mubr.msk.bf16.mxu0 %vm932_vm7, %v658_v12 }
  0xe0   : > { %2812 = vmatmul.mubr.msk.bf16.gmra.mrb[36].mxu0 %vm932_vm7, %v660_v13 }
 0x16b   : > { %v2753_v21 = vpop.f32.mrb[0].mxu0  ;;  %v2775_v22 = vpop.f32.mrb[0].mxu1 }
 0x16c   : > { %v3240_v24 = vpop.f32.mrb[1].mxu0  ;;  %v3242_v25 = vpop.f32.mrb[1].mxu1  ;;  %v1072_v29 = vrot.slane %v2753_v21, 7 }
 0x16d   : > { %v2754_v26 = vpop.f32.mrb[2].mxu0  ;;  %v2776_v27 = vpop.f32.mrb[2].mxu1  ;;  %v1070_v33 = vrot.slane %v3240_v24, 7 }
 0x16e   : > { %v1073_v30 = vrot.slane %v2754_v26, 7  ;;  %v994_v31 = vpop.f32.mrb[3].mxu0  ;;  %v1236_v32 = vpop.f32.mrb[3].mxu1 }
 0x16f   : > { %v1071_v34 = vrot.slane %v994_v31, 7 }
 0x170   : > { %v1107_v37 = vsel %vm4131_vm9, %v1072_v29, %v1073_v30 }
 0x171   : > { %v3254_v38 = vadd.f32 %v2776_v27, %v1107_v37  ;;  %v1108_v39 = vsel %vm4131_vm9, %v1071_v34, %v1072_v29  ;;  %v1109_v40 = vsel %vm4131_vm9, %v1070_v33, %v1071_v34  ;;  %v676_v29 = vadd.s32 112, %v3237_v19 }
 0x172   : > { %v1173_v42 = vsel %vm3247_vm10, 0.0, %v1108_v39  ;;  %v3264_v43 = vadd.f32 %v1236_v32, %v1109_v40  ;;  %v770_v32 = vand.u32 15, %v674_v14 }
 0x173   : > { %v3266_v44 = vadd.f32 %v2775_v22, %v1173_v42  ;;  %v2757_v45 = vpop.f32.mrb[4].mxu0  ;;  %v2779_v46 = vpop.f32.mrb[4].mxu1  ;;  %v784_v47 = vand.u32 15, %v676_v29  ;;  %v4169_v29 = vmov 0 }
 0x174   : > { %v1007_v48 = vpop.f32.mrb[5].mxu0  ;;  %v1249_v49 = vpop.f32.mrb[5].mxu1  ;;  %v1076_v55 = vrot.slane %v2757_v45, 7  ;;  %vm3329_vm15 = vcmp.eq.s32.totalorder %v770_v32, 0 }
 0x175   : > { %v1074_v51 = vrot.slane %v1007_v48, 7  ;;  %v2758_v53 = vpop.f32.mrb[6].mxu0  ;;  %v2780_v54 = vpop.f32.mrb[6].mxu1  ;;  %vm3336_vm0 = vcmp.eq.s32.totalorder %v784_v47, 0 }
 0x176   : > { %v1077_v56 = vrot.slane %v2758_v53, 7  ;;  %v1010_v57 = vpop.f32.mrb[7].mxu0  ;;  %v1252_v58 = vpop.f32.mrb[7].mxu1  ;;  %v4155_v53 = vmov 0 }
 0x177   : > { %v1106_v59 = vsel %vm4131_vm9, %v1073_v30, %v1074_v51  ;;  %v1075_v60 = vrot.slane %v1010_v57, 7  ;;  %v4156_v53 = vsel %vm3329_vm15, 4294967295, %v4155_v53 }
 0x178   : > { %v1175_v63 = vsel %vm3269_vm11, 0.0, %v1106_v59  ;;  %v1103_v0 = vsel %vm4131_vm9, %v1076_v55, %v1077_v56 }
 0x179   : > { %v3284_v2 = vadd.f32 %v1249_v49, %v1175_v63  ;;  %v3286_v3 = vadd.f32 %v2780_v54, %v1103_v0  ;;  %v1104_v4 = vsel %vm4131_vm9, %v1075_v60, %v1076_v55  ;;  %v1105_v5 = vsel %vm4131_vm9, %v1074_v51, %v1075_v60 }
 0x17a   : > { %v1177_v6 = vsel %vm3275_vm12, 0.0, %v1104_v4  ;;  %v3294_v7 = vadd.f32 %v1252_v58, %v1105_v5  ;;  %v680_v60 = vadd.s32 144, %v3237_v19  ;;  %v4157_v0 = vmov 0 }
 0x17b   : > { %v3296_v8 = vadd.f32 %v2779_v46, %v1177_v6  ;;  %v2761_v9 = vpop.f32.mrb[8].mxu0  ;;  %v2783_v10 = vpop.f32.mrb[8].mxu1  ;;  %v4158_v0 = vsel %vm3336_vm0, 4294967295, %v4157_v0  ;;  %v798_v5 = vand.u32 15, %v678_v50  ;;  %v686_v6 = vand.u32 15, %v3237_v19 }
 0x17c   : > { %v1023_v12 = vpop.f32.mrb[9].mxu0  ;;  %v1265_v13 = vpop.f32.mrb[9].mxu1  ;;  %v1080_v20 = vrot.slane %v2761_v9, 7  ;;  %v667_v50 = vadd.s32 40, %v3237_v19 }
 0x17d   : > { %v1078_v15 = vrot.slane %v1023_v12, 7  ;;  %v2762_v17 = vpop.f32.mrb[10].mxu0  ;;  %v2784_v18 = vpop.f32.mrb[10].mxu1  ;;  %vm3362_vm1 = vcmp.eq.s32.totalorder %v798_v5, 0  ;;  %vm3366_vm2 = vcmp.eq.s32.totalorder %v686_v6, 0 }
 0x17e   : > { %v1081_v21 = vrot.slane %v2762_v17, 7  ;;  %v1026_v22 = vpop.f32.mrb[11].mxu0  ;;  %v1268_v23 = vpop.f32.mrb[11].mxu1  ;;  %v663_v17 = vadd.s32 8, %v3237_v19  ;;  %v721_v6 = vand.u32 15, %v667_v50 }
 0x17f   : > { %v1102_v26 = vsel %vm4131_vm9, %v1077_v56, %v1078_v15  ;;  %v1079_v27 = vrot.slane %v1026_v22, 7 }
 0x180   : > { %v1179_v30 = vsel %vm3299_vm13, 0.0, %v1102_v26  ;;  %v1099_v31 = vsel %vm4131_vm9, %v1080_v20, %v1081_v21  ;;  %v665_v26 = vadd.s32 24, %v3237_v19  ;;  %v693_v47 = vand.u32 15, %v663_v17 }
 0x181   : > { %v3314_v34 = vadd.f32 %v1265_v13, %v1179_v30  ;;  %v3316_v36 = vadd.f32 %v2784_v18, %v1099_v31  ;;  %v1100_v37 = vsel %vm4131_vm9, %v1079_v27, %v1080_v20  ;;  %v1101_v39 = vsel %vm4131_vm9, %v1078_v15, %v1079_v27 }
 0x182   : > { %v1181_v40 = vsel %vm3305_vm14, 0.0, %v1100_v37  ;;  %v3324_v41 = vadd.f32 %v1268_v23, %v1101_v39  ;;  %v812_v15 = vand.u32 15, %v680_v60  ;;  %vm3411_vm5 = vcmp.eq.s32.totalorder %v693_v47, 15 }
 0x183   : > { %v3326_v42 = vadd.f32 %v2783_v10, %v1181_v40  ;;  %v2765_v45 = vpop.f32.mrb[12].mxu0  ;;  %v2787_v46 = vpop.f32.mrb[12].mxu1 }
 0x184   : > { %v1039_v48 = vpop.f32.mrb[13].mxu0  ;;  %v1281_v49 = vpop.f32.mrb[13].mxu1  ;;  %v1084_v56 = vrot.slane %v2765_v45, 7  ;;  %vm3370_vm3 = vcmp.eq.s32.totalorder %v812_v15, 0 }
 0x185   : > { %v1082_v51 = vrot.slane %v1039_v48, 7  ;;  %v2766_v54 = vpop.f32.mrb[14].mxu0  ;;  %v2788_v55 = vpop.f32.mrb[14].mxu1 }
 0x186   : > { %v1085_v57 = vrot.slane %v2766_v54, 7  ;;  %v1042_v58 = vpop.f32.mrb[15].mxu0  ;;  %v1284_v59 = vpop.f32.mrb[15].mxu1 }
 0x187   : > { %v1098_v62 = vsel %vm4131_vm9, %v1081_v21, %v1082_v51  ;;  %v1083_v63 = vrot.slane %v1042_v58, 7  ;;  %v707_v58 = vand.u32 15, %v665_v26 }
 0x188   : > { %v1183_v1 = vsel %vm3329_vm15, 0.0, %v1098_v62  ;;  %v1095_v4 = vsel %vm4131_vm9, %v1084_v56, %v1085_v57 }
 0x189   : > { %v3345_v9 = vadd.f32 %v1281_v49, %v1183_v1  ;;  %v3347_v10 = vadd.f32 %v2788_v55, %v1095_v4  ;;  %v1096_v11 = vsel %vm4131_vm9, %v1083_v63, %v1084_v56  ;;  %v1097_v12 = vsel %vm4131_vm9, %v1082_v51, %v1083_v63 }
 0x18a   : > { %v1185_v13 = vsel %vm3336_vm0, 0.0, %v1096_v11  ;;  %v3355_v14 = vadd.f32 %v1284_v59, %v1097_v12  ;;  %v3377_v51 = vstv %s2608_s24  ;;  %vm3415_vm7 = vcmp.eq.s32.totalorder %v707_v58, 15 }
 0x18b   : > { %v3358_v18 = vadd.f32 %v2787_v46, %v1185_v13  ;;  %v2769_v20 = vpop.f32.mrb[16].mxu0  ;;  %v2791_v21 = vpop.f32.mrb[16].mxu1  ;;  %v3405_v11 = vadd.s32 1, %v3377_v51  ;;  %v669_v13 = vadd.s32 56, %v3237_v19  ;;  %vm1645_vm8 = vcmp.lt.s32.totalorder %v3377_v51, 16 }
 0x18c   : > { %v1055_v22 = vpop.f32.mrb[17].mxu0  ;;  %v1297_v23 = vpop.f32.mrb[17].mxu1  ;;  %v1088_v37 = vrot.slane %v2769_v20, 7 }
 0x18d   : > { %v1086_v27 = vrot.slane %v1055_v22, 7  ;;  %v2770_v30 = vpop.f32.mrb[18].mxu0  ;;  %v2792_v32 = vpop.f32.mrb[18].mxu1 }
 0x18e   : > { %v1089_v39 = vrot.slane %v2770_v30, 7  ;;  %v1058_v40 = vpop.f32.mrb[19].mxu0  ;;  %v1300_v46 = vpop.f32.mrb[19].mxu1  ;;  %v671_v30 = vadd.s32 72, %v3237_v19 }
 0x18f   : > { %v1094_v48 = vsel %vm4131_vm9, %v1085_v57, %v1086_v27  ;;  %v1087_v49 = vrot.slane %v1058_v40, 7  ;;  %v3437_v40 = vadd.s32 104, %v3237_v19 }
 0x190   : > { %v1187_v54 = vsel %vm3362_vm1, 0.0, %v1094_v48  ;;  %v1110_v55 = vsel %vm4131_vm9, %v1089_v39, %v1070_v33  ;;  %v1091_v56 = vsel %vm4131_vm9, %v1088_v37, %v1089_v39  ;;  %vm1635_vm1 = vcmp.ge.s32.totalorder %v3377_v51, 0  ;;  %v3450_v48 = vld [vmem:[%s4126_s4] ss:$0 sm:$0xff] }
 0x191   : > { %v3387_v59 = vadd.f32 %v1297_v23, %v1187_v54  ;;  %v1171_v57 = vsel %vm3366_vm2, 0.0, %v1110_v55  ;;  %v3391_v60 = vadd.f32 %v2792_v32, %v1091_v56  ;;  %v1092_v62 = vsel %vm4131_vm9, %v1087_v49, %v1088_v37  ;;  %vm3483_vm6 = vmand %vm1635_vm1, %vm1645_vm8 }
 0x192   : > { %v1234_v63 = vadd.f32 %v3242_v25, %v1171_v57  ;;  %v1189_v24 = vsel %vm3370_vm3, 0.0, %v1092_v62  ;;  %v1093_v33 = vsel %vm4131_vm9, %v1086_v27, %v1087_v49  ;;  %v3420_v23 = vadd.s32 2, %v3377_v51 }
 0x193   : > { %v3400_v1 = vadd.f32 %v2791_v21, %v1189_v24  ;;  %v3402_v4 = vadd.f32 %v1300_v46, %v1093_v33  ;;  %v2797_v5 = vpop.f32.mrb[20].mxu0  ;;  %vm3424_vm3 = vcmp.eq.s32.totalorder %v721_v6, 15  ;;  %v3432_v32 = vadd.s32 88, %v3237_v19 }
 0x194   : > { %v3407_v12 = vpop.f32.mrb[21].mxu0  ;;  %v1438_v20 = vrot.slane %v2797_v5, 1  ;;  %v4170_v29 = vsel %vm3424_vm3, 4294967295, %v4169_v29  ;;  %v735_v39 = vand.u32 15, %v669_v13  ;;  %v3453_v49 = vadd.s32 120, %v3237_v19 }
 0x195   : > { %v2798_v25 = vpop.f32.mrb[22].mxu0  ;;  %v4138_v26 = vrot.slane %v3407_v12, 1  ;;  %v3459_v54 = vadd.s32 3, %v3377_v51  ;;  %v749_v58 = vand.u32 15, %v671_v30  ;;  %v763_v57 = vand.u32 15, %v3432_v32 }
 0x196   : > { %v1439_v21 = vrot.slane %v2798_v25, 1  ;;  %v1360_v22 = vpop.f32.mrb[23].mxu0  ;;  %v3470_v5 = vadd.s32 5, %v3377_v51  ;;  %vm3473_vm9 = vcmp.eq.s32.totalorder %v735_v39, 15  ;;  %v4171_v25 = vmov 0 }
 0x197   : > { %v1437_v27 = vrot.slane %v1360_v22, 1  ;;  %v4172_v25 = vsel %vm3473_vm9, 4294967295, %v4171_v25  ;;  %v3488_v39 = vadd.s32 7, %v3377_v51  ;;  %vm3492_vm15 = vcmp.eq.s32.totalorder %v749_v58, 15 }
 0x198   : > { %v1473_v37 = vsel %vm4139_vm4, %v1438_v20, %v1439_v21  ;;  %vm4177_vm8 = vcmp.lt.s32.totalorder %v3405_v11, 16  ;;  %vm4178_vm1 = vcmp.ge.s32.totalorder %v3405_v11, 0  ;;  %vm4184_vm13 = vcmp.ge.s32.totalorder %v3420_v23, 0 }
 0x199   : > { %v1559_v45 = vadd.f32 %v1473_v37, %v3266_v44  ;;  %v1474_v46 = vsel %vm4139_vm4, %v1437_v27, %v1438_v20  ;;  %v1475_v47 = vsel %vm4139_vm4, %v4138_v26, %v1437_v27  ;;  %v777_v20 = vand.u32 15, %v3437_v40  ;;  %vm3522_vm0 = vmand %vm4178_vm1, %vm4177_vm8 }
 0x19a   : > { %v1538_v50 = vsel %vm3411_vm5, 0.0, %v1474_v46  ;;  %v1557_v44 = vadd.f32 %v1475_v47, %v1234_v63  ;;  %v3467_v63 = vadd.s32 4, %v3377_v51  ;;  %v4175_v47 = vmov 0 }
 0x19b   : > { %v1558_v55 = vadd.f32 %v1538_v50, %v3264_v43  ;;  %v2801_v56 = vpop.f32.mrb[24].mxu0  ;;  %v1586_v33 = vadd.f32 %v3450_v48, %v1559_v45  ;;  %v4176_v47 = vsel %vm3492_vm15, 4294967295, %v4175_v47  ;;  %v3499_v50 = vadd.s32 152, %v3237_v19 }
 0x19c   : > { %v1584_v62 = vadd.f32 %v3450_v48, %v1557_v44  ;;  %v1373_v24 = vpop.f32.mrb[25].mxu0  ;;  %v1442_v32 = vrot.slane %v2801_v56, 1  ;;  %vm4183_vm1 = vcmp.lt.s32.totalorder %v3420_v23, 16 }
 0x19d   : > { %v1585_v6 = vadd.f32 %v3450_v48, %v1558_v55  ;;  %v1440_v43 = vrot.slane %v1373_v24, 1  ;;  %v2802_v13 = vpop.f32.mrb[26].mxu0  ;;  %vm3559_vm14 = vmand %vm4184_vm13, %vm4183_vm1  ;;  %vm3577_vm13 = vcmp.eq.s32.totalorder %v777_v20, 15 }
 0x19e   : > { %v1604_v30 = vmax.f32 %v1584_v62, 0.0  ;;  %v1443_v37 = vrot.slane %v2802_v13, 1  ;;  %v1376_v45 = vpop.f32.mrb[27].mxu0 }
 0x19f   : > { %v1472_v40 = vsel %vm4139_vm4, %v1439_v21, %v1440_v43  ;;  %v1441_v46 = vrot.slane %v1376_v45, 1  ;;  %v1605_v44 = vmax.f32 %v1585_v6, 0.0  ;;  %v1606_v21 = vmax.f32 %v1586_v33, 0.0 }
 0x1a0   : > { %v1540_v55 = vsel %vm3415_vm7, 0.0, %v1472_v40  ;;  %v1469_v56 = vsel %vm4139_vm4, %v1442_v32, %v1443_v37  ;;  %v3507_v58 = vsel %vm3483_vm6, %v1604_v30, 0.0 }
 0x1a1   : > { %v1560_v62 = vadd.f32 %v1540_v55, %v3254_v38  ;;  %v1563_v24 = vadd.f32 %v1469_v56, %v3296_v8  ;;  %v1470_v13 = vsel %vm4139_vm4, %v1441_v46, %v1442_v32  ;;  %v1471_v6 = vsel %vm4139_vm4, %v1440_v43, %v1441_v46 }
 0x1a2   : > { %v1542_v45 = vsel %vm3424_vm3, 0.0, %v1470_v13  ;;  %v1561_v40 = vadd.f32 %v1471_v6, %v3284_v2  ;;  %v3529_v38 = vadd.s32 6, %v3377_v51  ;;  %v3533_v8 = vsel %vm3483_vm6, %v1605_v44, 0.0  ;;  %v2938_v2 = vld [vmem:[%s4127_s5 + $0x20] ss:$0 sps:$4 sm:$0xff]  }
 0x1a3   : > { %v1562_v11 = vadd.f32 %v1542_v45, %v3294_v7  ;;  %v2805_v43 = vpop.f32.mrb[28].mxu0  ;;  %v1587_v30 = vadd.f32 %v3450_v48, %v1560_v62  ;;  %v1590_v32 = vadd.f32 %v3450_v48, %v1563_v24  ;;  %v3546_v44 = vadd.s32 136, %v3237_v19 }
 0x1a4   : > { %v1389_v55 = vpop.f32.mrb[29].mxu0  ;;  %v1588_v56 = vadd.f32 %v3450_v48, %v1561_v40  ;;  %vm4181_vm6 = vcmask 1043456   ;;  %v1687_v24 = vsel %vm3522_vm0, %v1606_v21, 0.0  ;;  %v4187_v46 = vmov 0 }
 0x1a5   : > { %2880 = vmatprep.subr.msk.bf16.mxu0 %vm4181_vm6, %v2938_v2  ;;  %vm4182_vm8 = vmmov %vm4181_vm6  ;;  %v1444_v13 = vrot.slane %v1389_v55, 1  ;;  %v3550_v6 = vpop.f32.mrb[30].mxu0  ;;  %v1607_v62 = vmax.f32 %v1587_v30, 0.0  ;;  %v1589_v45 = vadd.f32 %v3450_v48, %v1562_v11  ;;  %vm3563_vm6 = vcmp.eq.s32.totalorder %v763_v57, 15 }
 0x1a6   : > { %v2102_v7 = vsel %vm4182_vm8, %v2938_v2, 0  ;;  %v4188_v46 = vsel %vm3563_vm6, 4294967295, %v4187_v46  ;;  %v3570_v2 = vld [vmem:[%s4127_s5 + $0xc] sm:$0xff]   ;;  %v1446_v21 = vrot.slane %v2805_v43, 1  ;;  %v1447_v11 = vrot.slane %v3550_v6, 1  ;;  %v1392_v30 = vpop.f32.mrb[31].mxu0 }
 0x1a7   : > { %2858 = vmatpush3.bf16.msra.mxu0 %v2102_v7  ;;  %v1608_v55 = vmax.f32 %v1588_v56, 0.0  ;;  %v1610_v23 = vmax.f32 %v1590_v32, 0.0  ;;  %v1468_v26 = vsel %vm4139_vm4, %v1443_v37, %v1444_v13  ;;  %v1445_v27 = vrot.slane %v1392_v30, 1  ;;  %2835 = vmatprep.subr.bf16.mxu1 %v3570_v2 }
 0x1a8   : > { %v1688_v57 = vsel %vm3522_vm0, %v1607_v62, 0.0  ;;  %v1609_v22 = vmax.f32 %v1589_v45, 0.0  ;;  %v1544_v43 = vsel %vm3473_vm9, 0.0, %v1468_v26  ;;  %v1465_v37 = vsel %vm4139_vm4, %v1446_v21, %v1447_v11 }
 0x1a9   : > { %v3588_v32 = vpack.c.bf16 %v1688_v57, %v1687_v24  ;;  %v1689_v20 = vsel %vm3559_vm14, %v1608_v55, 0.0  ;;  %v1564_v33 = vadd.f32 %v1544_v43, %v3286_v3  ;;  %v1567_v56 = vadd.f32 %v1465_v37, %v3326_v42 }
 0x1aa   : > { %v1466_v6 = vsel %vm4139_vm4, %v1445_v27, %v1446_v21  ;;  %v1467_v62 = vsel %vm4139_vm4, %v1444_v13, %v1445_v27  ;;  %v1690_v24 = vsel %vm3559_vm14, %v1609_v22, 0.0  ;;  %vm4191_vm0 = vcmp.lt.s32.totalorder %v3459_v54, 16 }
 0x1ab   : > { %v1546_v26 = vsel %vm3492_vm15, 0.0, %v1466_v6  ;;  %v1565_v45 = vadd.f32 %v1467_v62, %v3314_v34  ;;  %1723 = vrot.lane.b32.xlu0 %v3588_v32, %s2981_s21  ;;  %vm4192_vm8 = vcmp.ge.s32.totalorder %v3459_v54, 0  ;;  %v805_v42 = vand.u32 15, %v3546_v44  ;;  %v2809_v13 = vpop.f32.mrb[32].mxu0 }
 0x1ac   : > { %vm3609_vm1 = vmand %vm4192_vm8, %vm4191_vm0  ;;  %v1566_v27 = vadd.f32 %v1546_v26, %v3324_v41  ;;  %v3615_v34 = vpack.c.bf16 %v1690_v24, %v1689_v20  ;;  %v1591_v21 = vadd.f32 %v3450_v48, %v1564_v33  ;;  %v1594_v40 = vadd.f32 %v3450_v48, %v1567_v56  ;;  %v1405_v22 = vpop.f32.mrb[33].mxu0 }
 0x1ad   : > { %v1592_v30 = vadd.f32 %v3450_v48, %v1565_v45  ;;  %v3623_v54 = vadd.s32 8, %v3377_v51  ;;  %v3626_v44 = vadd.s32 9, %v3377_v51  ;;  %v1448_v41 = vrot.slane %v1405_v22, 1  ;;  %v2810_v55 = vpop.f32.mrb[34].mxu0 }
 0x1ae   : > { %1725 = vrot.lane.b32.xlu1 %v3615_v34, %s2981_s21  ;;  %v1611_v57 = vmax.f32 %v1591_v21, 0.0  ;;  %v1691_v43 = vsel %vm3609_vm1, %v1610_v23, 0.0  ;;  %v4195_v37 = vand.u32 15, %v3453_v49  ;;  %v1593_v33 = vadd.f32 %v3450_v48, %v1566_v27  ;;  %v1408_v49 = vpop.f32.mrb[35].mxu0 }
 0x1af   : > { %vm4198_vm14 = vcmp.lt.s32.totalorder %v3467_v63, 16  ;;  %vm4199_vm8 = vcmp.ge.s32.totalorder %v3467_v63, 0  ;;  %v1450_v56 = vrot.slane %v2809_v13, 1  ;;  %v1451_v6 = vrot.slane %v2810_v55, 1  ;;  %1740 = vrot.lane.b32.xlu0 %v3615_v34, %s2983_s12 }
 0x1b0   : > { %vm3634_vm0 = vcmp.eq.s32.totalorder %v4195_v37, 15  ;;  %vm3643_vm4 = vmand %vm4199_vm8, %vm4198_vm14  ;;  %v4202_v23 = vand.u32 15, %v3499_v50  ;;  %v1612_v26 = vmax.f32 %v1592_v30, 0.0  ;;  %v1614_v45 = vmax.f32 %v1594_v40, 0.0 }
 0x1b1   : > { %vm4205_vm14 = vcmp.lt.s32.totalorder %v3237_v19, 7  ;;  %v1449_v24 = vrot.slane %v1408_v49, 1  ;;  %v1692_v27 = vsel %vm3609_vm1, %v1611_v57, 0.0  ;;  %v1613_v13 = vmax.f32 %v1593_v33, 0.0 }
 0x1b2   : > { %vm3651_vm15 = vcmp.eq.s32.totalorder %v4202_v23, 15  ;;  %v1464_v63 = vsel %vm4205_vm14, %v1447_v11, %v1448_v41  ;;  %vm3659_vm8 = vcmp.eq.s32.totalorder %v805_v42, 15  ;;  %vm4208_vm3 = vmmov %vm4205_vm14  ;;  %v3667_v30 = vpack.c.bf16 %v1692_v27, %v1691_v43 }
 0x1b3   : > { %v1548_v50 = vsel %vm3563_vm6, 0.0, %v1464_v63  ;;  %v1461_v22 = vsel %vm4208_vm3, %v1450_v56, %v1451_v6  ;;  %v1693_v11 = vsel %vm3643_vm4, %v1612_v26, 0.0  ;;  %vm4209_vm1 = vmmov %vm4208_vm3  ;;  %vm4211_vm3 = vcmp.lt.s32.totalorder %v3470_v5, 16 }
 0x1b4   : > { %v1568_v40 = vadd.f32 %v1548_v50, %v3316_v36  ;;  %v1571_v3 = vadd.f32 %v1461_v22, %v3358_v18  ;;  %v1462_v42 = vsel %vm4209_vm1, %v1449_v24, %v1450_v56  ;;  %vm4210_vm14 = vmmov %vm4209_vm1  ;;  %1727 = vrot.lane.b32.xlu0 %v3667_v30, %s2981_s21  ;;  %1742 = vrot.lane.b32.xlu1 %v3667_v30, %s2983_s12  ;;  %v1694_v36 = vsel %vm3643_vm4, %v1613_v13, 0.0 }
 0x1b5   : > { %v1463_v55 = vsel %vm4210_vm14, %v1448_v41, %v1449_v24  ;;  %v1550_v57 = vsel %vm3577_vm13, 0.0, %v1462_v42  ;;  %vm4212_vm1 = vcmp.ge.s32.totalorder %v3470_v5, 0  ;;  %v2813_v41 = vpop.f32.mrb[36].mxu0  ;;  %v3698_v37 = vpack.c.bf16 %v1694_v36, %v1693_v11 }
 0x1b6   : > { %v1569_v43 = vadd.f32 %v1463_v55, %v3345_v9  ;;  %vm3692_vm14 = vmand %vm4212_vm1, %vm4211_vm3  ;;  %v1570_v9 = vadd.f32 %v1550_v57, %v3355_v14  ;;  %v1595_v33 = vadd.f32 %v3450_v48, %v1568_v40  ;;  %v1598_v51 = vadd.f32 %v3450_v48, %v1571_v3  ;;  %v1421_v56 = vpop.f32.mrb[37].mxu0 }
 0x1b7   : > { %v1452_v5 = vrot.slane %v1421_v56, 1  ;;  %v2814_v23 = vpop.f32.mrb[38].mxu0  ;;  %v1695_v14 = vsel %vm3692_vm14, %v1614_v45, 0.0  ;;  %v1454_v24 = vrot.slane %v2813_v41, 1  ;;  %vm4215_vm4 = vcmp.lt.s32.totalorder %v3237_v19, 7 }
 0x1b8   : > { %v1596_v49 = vadd.f32 %v3450_v48, %v1569_v43  ;;  %v1615_v26 = vmax.f32 %v1595_v33, 0.0  ;;  %v1597_v63 = vadd.f32 %v3450_v48, %v1570_v9  ;;  %v1455_v27 = vrot.slane %v2814_v23, 1  ;;  %1744 = vrot.lane.b32.xlu0 %v3698_v37, %s2983_s12  ;;  %1729 = vrot.lane.b32.xlu1 %v3698_v37, %s2981_s21  ;;  %v1424_v13 = vpop.f32.mrb[39].mxu0  ;;  %vm4220_vm9 = vmmov %vm4215_vm4 }
 0x1b9   : > { %v1618_v22 = vmax.f32 %v1598_v51, 0.0  ;;  %v1460_v11 = vsel %vm4215_vm4, %v1451_v6, %v1452_v5  ;;  %v1453_v40 = vrot.slane %v1424_v13, 1  ;;  %vm4216_vm3 = vcmp.lt.s32.totalorder %v3529_v38, 16 }
 0x1ba   : > { %v1616_v50 = vmax.f32 %v1596_v49, 0.0  ;;  %v1696_v45 = vsel %vm3692_vm14, %v1615_v26, 0.0  ;;  %v1617_v3 = vmax.f32 %v1597_v63, 0.0  ;;  %vm4217_vm6 = vcmp.ge.s32.totalorder %v3529_v38, 0 }
 0x1bb   : > { %vm3721_vm1 = vmand %vm4217_vm6, %vm4216_vm3  ;;  %v1552_v55 = vsel %vm3634_vm0, 0.0, %v1460_v11  ;;  %v1457_v57 = vsel %vm4220_vm9, %v1454_v24, %v1455_v27  ;;  %v4221_v6 = vrot.slane %v3407_v12, 1  ;;  %v3733_v36 = vpack.c.bf16 %v1696_v45, %v1695_v14 }
 0x1bc   : > { %v1572_v18 = vadd.f32 %v1552_v55, %v3347_v10  ;;  %v1575_v9 = vadd.f32 %v1457_v57, %v3400_v1  ;;  %vm4222_vm6 = vmmov %vm4215_vm4  ;;  %v1697_v10 = vsel %vm3721_vm1, %v1616_v50, 0.0  ;;  %vm4226_vm3 = vcmp.lt.s32.totalorder %v3626_v44, 16 }
 0x1bd   : > { %v1476_v43 = vsel %vm4215_vm4, %v1455_v27, %v4221_v6  ;;  %v1458_v41 = vsel %vm4222_vm6, %v1453_v40, %v1454_v24  ;;  %vm4223_vm9 = vmmov %vm4215_vm4  ;;  %1731 = vrot.lane.b32.xlu0 %v3733_v36, %s2981_s21  ;;  %1746 = vrot.lane.b32.xlu1 %v3733_v36, %s2983_s12  ;;  %vm4228_vm6 = vcmp.lt.s32.totalorder %v3623_v54, 16  ;;  %v4230_v45 = vpack.c.bf16 %v3533_v8, %v3507_v58 }
 0x1be   : > { %v1556_v38 = vsel %vm3651_vm15, 0.0, %v1476_v43  ;;  %v1459_v12 = vsel %vm4223_vm9, %v1452_v5, %v1453_v40  ;;  %v1554_v51 = vsel %vm3659_vm8, 0.0, %v1458_v41  ;;  %v1599_v56 = vadd.f32 %v3450_v48, %v1572_v18 }
 0x1bf   : > { %v1576_v33 = vadd.f32 %v1556_v38, %v3391_v60  ;;  %v1573_v1 = vadd.f32 %v1459_v12, %v3387_v59  ;;  %v1574_v62 = vadd.f32 %v1554_v51, %v3402_v4  ;;  %v1698_v60 = vsel %vm3721_vm1, %v1617_v3, 0.0  ;;  %v2940_v38 = vld [vmem:[%s4127_s5 + $0x14] ss:$0 sps:$4 sm:$0xff]  }
 0x1c0   : > { %v3757_v21 = vpack.c.bf16 %v1698_v60, %v1697_v10  ;;  %vm4224_vm15 = vcmp.lt.s32.totalorder %v3488_v39, 16  ;;  %vm4225_vm8 = vcmp.ge.s32.totalorder %v3488_v39, 0  ;;  %v1602_v49 = vadd.f32 %v3450_v48, %v1575_v9 }
 0x1c1   : > { %vm1662_vm14 = vmand %vm4225_vm8, %vm4224_vm15  ;;  %v1603_v5 = vadd.f32 %v3450_v48, %v1576_v33  ;;  %v1619_v23 = vmax.f32 %v1599_v56, 0.0  ;;  %v1600_v59 = vadd.f32 %v3450_v48, %v1573_v1  ;;  %v1601_v4 = vadd.f32 %v3450_v48, %v1574_v62 }
 0x1c2   : > { %vm4227_vm1 = vcmp.ge.s32.totalorder %v3626_v44, 0  ;;  %1748 = vrot.lane.b32.xlu0 %v3757_v21, %s2983_s12  ;;  %1733 = vrot.lane.b32.xlu1 %v3757_v21, %s2981_s21  ;;  %vm4229_vm9 = vcmp.ge.s32.totalorder %v3623_v54, 0  ;;  %v1622_v39 = vmax.f32 %v1602_v49, 0.0  ;;  %v1699_v14 = vsel %vm1662_vm14, %v1618_v22, 0.0 }
 0x1c3   : > { %vm1664_vm4 = vmand %vm4227_vm1, %vm4226_vm3  ;;  %v1623_v26 = vmax.f32 %v1603_v5, 0.0  ;;  %v1700_v48 = vsel %vm1662_vm14, %v1619_v23, 0.0  ;;  %v1620_v63 = vmax.f32 %v1600_v59, 0.0  ;;  %v1621_v24 = vmax.f32 %v1601_v4, 0.0 }
 0x1c4   : > { %vm1663_vm15 = vmand %vm4229_vm9, %vm4228_vm6  ;;  %v3779_v27 = vpack.c.bf16 %v1700_v48, %v1699_v14  ;;  %v1703_v44 = vsel %vm1664_vm4, %v1622_v39, 0.0  ;;  %vm1780_vm8 = vcmask 130048   ;;  %vm1813_vm14 = vcmask 195584  }
 0x1c5   : > { %v1704_v13 = vsel %vm1664_vm4, %v1623_v26, 0.0  ;;  %v1701_v50 = vsel %vm1663_vm15, %v1620_v63, 0.0  ;;  %v1702_v11 = vsel %vm1663_vm15, %v1621_v24, 0.0  ;;  %vm4231_vm3 = vcmask 64512  }
 0x1c6   : > { %v1714_v40 = vpack.c.bf16 %v1704_v13, %v1703_v44  ;;  %1735 = vrot.lane.b32.xlu0 %v3779_v27, %s2981_s21  ;;  %1750 = vrot.lane.b32.xlu1 %v3779_v27, %s2983_s12  ;;  %v1713_v54 = vpack.c.bf16 %v1702_v11, %v1701_v50  ;;  %vm4232_vm1 = vmmov %vm4231_vm3  ;;  %vm4234_vm6 = vcmask 1043456  }
 0x1c7   : > { %vm4233_vm4 = vmmov %vm4232_vm1 }
 0x1c8   : > { %vm4235_vm9 = vmmov %vm4234_vm6 }
 0x1c9   : > { %vm4236_vm15 = vmmov %vm4232_vm1 }
 0x1ca   : > { %1752 = vrot.lane.b32.xlu0 %v1713_v54, %s2983_s12  ;;  %1737 = vrot.lane.b32.xlu1 %v1713_v54, %s2981_s21 }
 0x1ce   : > { %1754 = vrot.lane.b32.xlu1 %v1714_v40, %s2983_s12 }
 0x21d   : > { %v1724_v22 = vpop.permute.xlu0 %1723 }
 0x21e   : > { %v1758_v3 = vsel %vm4231_vm3, %v4230_v45, %v1724_v22  ;;  %vm4237_vm3 = vmmov %vm4232_vm1 }
 0x220   : > { %v1726_v42 = vpop.permute.xlu1 %1725 }
 0x221   : > { %v1741_v55 = vpop.permute.xlu0 %1740  ;;  %v1761_v6 = vsel %vm4232_vm1, %v3588_v32, %v1726_v42  ;;  %v1989_v32 = vsel %vm4235_vm9, %v2940_v38, 0 }
 0x222   : > { %v1782_v57 = vsel %vm1780_vm8, %v1758_v3, %v1741_v55 }
 0x223   : > { %2819 = vmatprep.mubr.msk.bf16.mxu1 %vm1813_vm14, %v1782_v57  ;;  %2859 = vmatprep.mubr.msk.bf16.mxu0 %vm1813_vm14, %v1782_v57 }
 0x226   : > { %v1728_v43 = vpop.permute.xlu0 %1727  ;;  %v1743_v18 = vpop.permute.xlu1 %1742 }
 0x227   : > { %v1784_v58 = vsel %vm1780_vm8, %v1761_v6, %v1743_v18  ;;  %v1764_v8 = vsel %vm4233_vm4, %v3615_v34, %v1728_v43  ;;  %vm4238_vm4 = vmmov %vm4232_vm1 }
 0x228   : > { %2820 = vmatmul.mubr.msk.bf16.vlgmr.msra.gmra.mrb[20].mxu1 %vm1813_vm14, %v1784_v58  ;;  %2860 = vmatmul.mubr.msk.bf16.vlgmr.msra.gmra.mrb[40].mxu0 %vm1813_vm14, %v1784_v58 }
 0x229   : > { %2836 = vmatpush3.bf16.msra.mxu1 %v3570_v2 }
 0x22a   : > { %v1745_v9 = vpop.permute.xlu0 %1744  ;;  %v1730_v41 = vpop.permute.xlu1 %1729  ;;  %2879 = vmatprep.subr.msk.bf16.mxu1 %vm4234_vm6, %v2940_v38  ;;  %vm4239_vm6 = vmmov %vm4232_vm1 }
 0x22b   : > { %v1786_v33 = vsel %vm1780_vm8, %v1764_v8, %v1745_v9  ;;  %v1767_v12 = vsel %vm4236_vm15, %v3667_v30, %v1730_v41 }
 0x22c   : > { %2823 = vmatprep.mubr.msk.bf16.mxu1 %vm1813_vm14, %v1786_v33  ;;  %2863 = vmatprep.mubr.msk.bf16.mxu0 %vm1813_vm14, %v1786_v33 }
 0x22d   : > { %2838 = vmatpush3.bf16.msra.mxu1 %v1989_v32 }
 0x22f   : > { %v1732_v2 = vpop.permute.xlu0 %1731  ;;  %v1747_v51 = vpop.permute.xlu1 %1746 }
 0x230   : > { %v1788_v34 = vsel %vm1780_vm8, %v1767_v12, %v1747_v51  ;;  %v1770_v10 = vsel %vm4237_vm3, %v3698_v37, %v1732_v2 }
 0x231   : > { %2824 = vmatmul.mubr.msk.bf16.gmra.mrb[24].mxu1 %vm1813_vm14, %v1788_v34  ;;  %2864 = vmatmul.mubr.msk.bf16.gmra.mrb[44].mxu0 %vm1813_vm14, %v1788_v34 }
 0x234   : > { %v1749_v1 = vpop.permute.xlu0 %1748  ;;  %v1734_v62 = vpop.permute.xlu1 %1733 }
 0x235   : > { %v1790_v60 = vsel %vm1780_vm8, %v1770_v10, %v1749_v1  ;;  %v1773_v30 = vsel %vm4232_vm1, %v3733_v36, %v1734_v62 }
 0x236   : > { %2827 = vmatprep.mubr.msk.bf16.mxu1 %vm1813_vm14, %v1790_v60  ;;  %2867 = vmatprep.mubr.msk.bf16.mxu0 %vm1813_vm14, %v1790_v60 }
 0x238   : > { %v1736_v56 = vpop.permute.xlu0 %1735  ;;  %v1751_v49 = vpop.permute.xlu1 %1750 }
 0x239   : > { %v1792_v5 = vsel %vm1780_vm8, %v1773_v30, %v1751_v49  ;;  %v1776_v37 = vsel %vm4238_vm4, %v3757_v21, %v1736_v56 }
 0x23a   : > { %2828 = vmatmul.mubr.msk.bf16.gmra.mrb[28].mxu1 %vm1813_vm14, %v1792_v5  ;;  %2868 = vmatmul.mubr.msk.bf16.gmra.mrb[48].mxu0 %vm1813_vm14, %v1792_v5 }
 0x23c   : > { %v1753_v23 = vpop.permute.xlu0 %1752  ;;  %v1738_v59 = vpop.permute.xlu1 %1737 }
 0x23d   : > { %v1794_v4 = vsel %vm1780_vm8, %v1776_v37, %v1753_v23  ;;  %v1779_v36 = vsel %vm4239_vm6, %v3779_v27, %v1738_v59 }
 0x23e   : > { %2831 = vmatprep.mubr.msk.bf16.mxu1 %vm1813_vm14, %v1794_v4  ;;  %2871 = vmatprep.mubr.msk.bf16.mxu0 %vm1813_vm14, %v1794_v4 }
 0x240   : > { %v1755_v39 = vpop.permute.xlu1 %1754 }
 0x241   : > { %v1796_v26 = vsel %vm1780_vm8, %v1779_v36, %v1755_v39  ;;  %vm4240_vm8 = vcmp.lt.s32.totalorder %v3237_v19, 7 }
 0x242   : > { %2832 = vmatmul.mubr.msk.bf16.gmra.mrb[32].mxu1 %vm1813_vm14, %v1796_v26  ;;  %2872 = vmatmul.mubr.msk.bf16.gmra.mrb[52].mxu0 %vm1813_vm14, %v1796_v26  ;;  %vm4243_vm15 = vmmov %vm4240_vm8 }
 0x243   : > { %2839 = vmatprep.mubr.msk.bf16.mxu1 %vm1813_vm14, %v1782_v57  ;;  %vm4245_vm1 = vmmov %vm4240_vm8 }
 0x244   : > { %vm4246_vm4 = vmmov %vm4245_vm1 }
 0x24a   : > { %2840 = vmatmul.mubr.msk.bf16.vlgmr.msra.gmra.mrb[36].mxu1 %vm1813_vm14, %v1784_v58 }
 0x24b   : > { %2843 = vmatprep.mubr.msk.bf16.mxu1 %vm1813_vm14, %v1786_v33 }
 0x252   : > { %2844 = vmatmul.mubr.msk.bf16.gmra.mrb[40].mxu1 %vm1813_vm14, %v1788_v34 }
 0x253   : > { %2847 = vmatprep.mubr.msk.bf16.mxu1 %vm1813_vm14, %v1790_v60 }
 0x25a   : > { %2848 = vmatmul.mubr.msk.bf16.gmra.mrb[44].mxu1 %vm1813_vm14, %v1792_v5 }
 0x25b   : > { %2851 = vmatprep.mubr.msk.bf16.mxu1 %vm1813_vm14, %v1794_v4 }
 0x262   : > { %2852 = vmatmul.mubr.msk.bf16.gmra.mrb[48].mxu1 %vm1813_vm14, %v1796_v26  ;;  %vm4241_vm14 = vcmp.lt.s32.totalorder %v3237_v19, 1 }
 0x263   : > { %vm4242_vm9 = vmmov %vm4241_vm14 }
 0x264   : > { %vm4244_vm3 = vmmov %vm4242_vm9 }
 0x265   : > { %vm4247_vm6 = vmmov %vm4244_vm3 }
 0x2fb   : > { %v2821_v21 = vpop.f32.mrb[20].mxu1  ;;  %v2861_v14 = vpop.f32.mrb[40].mxu0 }
 0x2fc   : > { %v3844_v48 = vpop.f32.mrb[21].mxu1  ;;  %v3846_v63 = vpop.f32.mrb[41].mxu0  ;;  %v1933_v44 = vrot.slane %v2821_v21, 7  ;;  %v2203_v13 = vrot.slane %v2861_v14, 1 }
 0x2fd   : > { %v2822_v24 = vpop.f32.mrb[22].mxu1  ;;  %v2862_v27 = vpop.f32.mrb[42].mxu0  ;;  %v1931_v22 = vrot.slane %v3844_v48, 7  ;;  %v2201_v45 = vrot.slane %v3846_v63, 1  ;;  %v3992_v63 = vld [vmem:[%s4128_s6] ss:$0 sm:$0xff] }
 0x2fe   : > { %v1934_v50 = vrot.slane %v2822_v24, 7  ;;  %v2204_v11 = vrot.slane %v2862_v27, 1  ;;  %v1871_v40 = vpop.f32.mrb[23].mxu1  ;;  %v2141_v54 = vpop.f32.mrb[43].mxu0 }
 0x2ff   : > { %v1932_v3 = vrot.slane %v1871_v40, 7  ;;  %v2202_v42 = vrot.slane %v2141_v54, 1 }
 0x300   : > { %v3852_v55 = vsel %vm4240_vm8, %v2203_v13, %v2204_v11  ;;  %v3856_v57 = vsel %vm4241_vm14, %v1933_v44, %v1934_v50  ;;  %vm4248_vm8 = vmmov %vm4245_vm1 }
 0x301   : > { %v3860_v6 = vsel %vm4242_vm9, %v1932_v3, %v1933_v44  ;;  %v3866_v43 = vsel %vm4243_vm15, %v2201_v45, %v2202_v42  ;;  %v3872_v18 = vsel %vm4244_vm3, %v1931_v22, %v1932_v3  ;;  %v3876_v38 = vsel %vm4245_vm1, %v2202_v42, %v2203_v13  ;;  %vm4249_vm14 = vmmov %vm4244_vm3 }
 0x302   : > { %vm4250_vm9 = vmmov %vm4244_vm3 }
 0x303   : > { %vm4251_vm15 = vmmov %vm4245_vm1 }
 0x304   : > { %v2825_v58 = vpop.f32.mrb[24].mxu1  ;;  %v2865_v8 = vpop.f32.mrb[44].mxu0 }
 0x305   : > { %v1884_v9 = vpop.f32.mrb[25].mxu1  ;;  %v2154_v41 = vpop.f32.mrb[45].mxu0  ;;  %v1937_v51 = vrot.slane %v2825_v58, 7  ;;  %v2207_v34 = vrot.slane %v2865_v8, 1 }
 0x306   : > { %v1935_v32 = vrot.slane %v1884_v9, 7  ;;  %v2205_v33 = vrot.slane %v2154_v41, 1  ;;  %v2826_v12 = vpop.f32.mrb[26].mxu1  ;;  %v2866_v2 = vpop.f32.mrb[46].mxu0 }
 0x307   : > { %v1938_v10 = vrot.slane %v2826_v12, 7  ;;  %v2208_v1 = vrot.slane %v2866_v2, 1  ;;  %v1887_v62 = vpop.f32.mrb[27].mxu1  ;;  %v2157_v60 = vpop.f32.mrb[47].mxu0 }
 0x308   : > { %v1936_v30 = vrot.slane %v1887_v62, 7  ;;  %v2206_v56 = vrot.slane %v2157_v60, 1  ;;  %v3880_v49 = vsel %vm4246_vm4, %v2204_v11, %v2205_v33  ;;  %v3884_v5 = vsel %vm4247_vm6, %v1934_v50, %v1935_v32  ;;  %vm4252_vm4 = vmmov %vm4245_vm1 }
 0x309   : > { %v3888_v37 = vsel %vm4248_vm8, %v2207_v34, %v2208_v1  ;;  %v3892_v23 = vsel %vm4249_vm14, %v1937_v51, %v1938_v10  ;;  %vm4253_vm6 = vmmov %vm4244_vm3  ;;  %v2236_v31 = vsel %vm3415_vm7, 0.0, %v3880_v49  ;;  %vm4273_vm7 = vnez %v4188_v46 }
 0x30a   : > { %v3896_v59 = vsel %vm4250_vm9, %v1936_v30, %v1937_v51  ;;  %v3900_v4 = vsel %vm4251_vm15, %v2205_v33, %v2206_v56  ;;  %v3904_v36 = vsel %vm4244_vm3, %v1935_v32, %v1936_v30  ;;  %v3908_v39 = vsel %vm4245_vm1, %v2206_v56, %v2207_v34  ;;  %vm4254_vm8 = vmmov %vm4245_vm1 }
 0x30b   : > { %vm4255_vm14 = vmmov %vm4244_vm3  ;;  %v1969_v15 = vsel %vm3275_vm12, 0.0, %v3896_v59  ;;  %vm4270_vm12 = vnez %v4170_v29 }
 0x30c   : > { %vm4256_vm9 = vmmov %vm4244_vm3 }
 0x30d   : > { %v2829_v26 = vpop.f32.mrb[28].mxu1  ;;  %v2869_v21 = vpop.f32.mrb[48].mxu0  ;;  %vm4257_vm15 = vmmov %vm4245_vm1 }
 0x30e   : > { %v1900_v14 = vpop.f32.mrb[29].mxu1  ;;  %v2170_v24 = vpop.f32.mrb[49].mxu0  ;;  %v1941_v11 = vrot.slane %v2829_v26, 7  ;;  %v2211_v40 = vrot.slane %v2869_v21, 1 }
 0x30f   : > { %v1939_v27 = vrot.slane %v1900_v14, 7  ;;  %v2209_v44 = vrot.slane %v2170_v24, 1  ;;  %v2830_v13 = vpop.f32.mrb[30].mxu1  ;;  %v2870_v50 = vpop.f32.mrb[50].mxu0 }
 0x310   : > { %v1942_v54 = vrot.slane %v2830_v13, 7  ;;  %v2212_v3 = vrot.slane %v2870_v50, 1  ;;  %v1903_v42 = vpop.f32.mrb[31].mxu1  ;;  %v2173_v58 = vpop.f32.mrb[51].mxu0 }
 0x311   : > { %v1940_v8 = vrot.slane %v1903_v42, 7  ;;  %v2210_v9 = vrot.slane %v2173_v58, 1  ;;  %v3912_v41 = vsel %vm4252_vm4, %v2208_v1, %v2209_v44  ;;  %v3916_v32 = vsel %vm4253_vm6, %v1938_v10, %v1939_v27  ;;  %vm4258_vm4 = vmmov %vm4245_vm1 }
 0x312   : > { %v3920_v33 = vsel %vm4254_vm8, %v2211_v40, %v2212_v3  ;;  %v3924_v12 = vsel %vm4255_vm14, %v1941_v11, %v1942_v54  ;;  %vm4259_vm6 = vmmov %vm4244_vm3 }
 0x313   : > { %v3928_v2 = vsel %vm4256_vm9, %v1940_v8, %v1941_v11  ;;  %v3932_v51 = vsel %vm4257_vm15, %v2209_v44, %v2210_v9  ;;  %v3936_v34 = vsel %vm4244_vm3, %v1939_v27, %v1940_v8  ;;  %v3940_v10 = vsel %vm4245_vm1, %v2210_v9, %v2211_v40  ;;  %vm4260_vm8 = vmmov %vm4244_vm3 }
 0x314   : > { %vm4261_vm14 = vmmov %vm4245_vm1 }
 0x315   : > { %v2833_v1 = vpop.f32.mrb[32].mxu1  ;;  %v2873_v62 = vpop.f32.mrb[52].mxu0  ;;  %vm4262_vm9 = vmmov %vm4245_vm1 }
 0x316   : > { %v1916_v60 = vpop.f32.mrb[33].mxu1  ;;  %v2186_v30 = vpop.f32.mrb[53].mxu0  ;;  %v1945_v24 = vrot.slane %v2833_v1, 7  ;;  %v2215_v13 = vrot.slane %v2873_v62, 1  ;;  %vm4263_vm15 = vmmov %vm4244_vm3 }
 0x317   : > { %v1943_v56 = vrot.slane %v1916_v60, 7  ;;  %v2213_v26 = vrot.slane %v2186_v30, 1  ;;  %v2834_v21 = vpop.f32.mrb[34].mxu1  ;;  %v2874_v14 = vpop.f32.mrb[54].mxu0  ;;  %vm4264_vm3 = vmmov %vm4245_vm1  ;;  %v1965_v30 = vsel %vm3247_vm10, 0.0, %v3860_v6  ;;  %vm2368_vm10 = vcmask 60416  }
 0x318   : > { %v1946_v44 = vrot.slane %v2834_v21, 7  ;;  %v2216_v50 = vrot.slane %v2874_v14, 1  ;;  %v1919_v11 = vpop.f32.mrb[35].mxu1  ;;  %v2189_v42 = vpop.f32.mrb[55].mxu0  ;;  %vm4265_vm1 = vmmov %vm4259_vm6 }
 0x319   : > { %v1944_v27 = vrot.slane %v1919_v11, 7  ;;  %v2214_v58 = vrot.slane %v2189_v42, 1  ;;  %v3944_v40 = vsel %vm4258_vm4, %v2212_v3, %v2213_v26  ;;  %v3948_v8 = vsel %vm4259_vm6, %v1942_v54, %v1943_v56  ;;  %vm4266_vm4 = vmmov %vm4264_vm3 }
 0x31a   : > { %v1962_v9 = vsel %vm4260_vm8, %v1946_v44, %v1931_v22  ;;  %v3956_v1 = vsel %vm4261_vm14, %v2215_v13, %v2216_v50  ;;  %v3972_v48 = vsel %vm4265_vm1, %v1945_v24, %v1946_v44  ;;  %v3978_v22 = vsel %vm4266_vm4, %v2216_v50, %v2201_v45  ;;  %vm4267_vm6 = vmmov %vm4265_vm1 }
 0x31b   : > { %v3960_v62 = vsel %vm4262_vm9, %v2214_v58, %v2215_v13  ;;  %v3964_v3 = vsel %vm4263_vm15, %v1944_v27, %v1945_v24  ;;  %v3968_v54 = vsel %vm4264_vm3, %v2213_v26, %v2214_v58  ;;  %v3982_v60 = vsel %vm4267_vm6, %v1943_v56, %v1944_v27 }
 0x31c   : > { %v1963_v14 = vsel %vm3366_vm2, 0.0, %v1962_v9  ;;  %v2234_v42 = vsel %vm3411_vm5, 0.0, %v3876_v38  ;;  %vm4271_vm2 = vnez %v4154_v28  ;;  %vm4272_vm5 = vnez %v4152_v16 }
 0x31d   : > { %v2841_v26 = vpop.f32.mrb[36].mxu1  ;;  %vm4274_vm8 = vnez %v4176_v47  ;;  %vm4275_vm14 = vnez %v4158_v0  ;;  %vm4276_vm9 = vnez %v4156_v53 }
 0x31e   : > { %v2034_v21 = vadd.f32 %v2841_v26, %v1965_v30  ;;  %v2025_v24 = vpop.f32.mrb[37].mxu1  ;;  %v1967_v30 = vsel %vm3269_vm11, 0.0, %v3884_v5  ;;  %vm4269_vm11 = vnez %v4172_v25 }
 0x31f   : > { %v2026_v45 = vadd.f32 %v2025_v24, %v1963_v14  ;;  %v2842_v19 = vpop.f32.mrb[38].mxu1  ;;  %v2240_v5 = vsel %vm4269_vm11, 0.0, %v3912_v41 }
 0x320   : > { %v2251_v56 = vadd.f32 %v3852_v55, %v2034_v21  ;;  %v2037_v13 = vadd.f32 %v2842_v19, %v3856_v57  ;;  %v2028_v35 = vpop.f32.mrb[39].mxu1 }
 0x321   : > { %v2249_v6 = vadd.f32 %v3866_v43, %v2026_v45  ;;  %v2029_v44 = vadd.f32 %v2028_v35, %v3872_v18 }
 0x322   : > { %v2274_v50 = vadd.f32 %v3992_v63, %v2251_v56  ;;  %v2252_v11 = vadd.f32 %v2236_v31, %v2037_v13 }
 0x323   : > { %v2272_v55 = vadd.f32 %v3992_v63, %v2249_v6  ;;  %v2250_v27 = vadd.f32 %v2234_v42, %v2029_v44 }
 0x324   : > { %v2290_v57 = vmax.f32 %v2274_v50, 0.0  ;;  %v2275_v58 = vadd.f32 %v3992_v63, %v2252_v11  ;;  %v1973_v50 = vsel %vm4271_vm2, 0.0, %v3928_v2 }
 0x325   : > { %v2288_v17 = vmax.f32 %v2272_v55, 0.0  ;;  %v2273_v43 = vadd.f32 %v3992_v63, %v2250_v27  ;;  %v2845_v18 = vpop.f32.mrb[40].mxu1  ;;  %v1971_v55 = vsel %vm4272_vm5, 0.0, %v3916_v32  ;;  %v2244_v32 = vsel %vm4273_vm7, 0.0, %v3944_v40 }
 0x326   : > { %v2672_v38 = vpack.c.bf16 %v2290_v57, %v2290_v57  ;;  %v2291_v49 = vmax.f32 %v2275_v58, 0.0  ;;  %v2050_v9 = vadd.f32 %v2845_v18, %v1969_v15  ;;  %v2041_v26 = vpop.f32.mrb[41].mxu1 }
 0x327   : > { %v2670_v21 = vpack.c.bf16 %v2288_v17, %v2288_v17  ;;  %v2289_v14 = vmax.f32 %v2273_v43, 0.0  ;;  %v2042_v24 = vadd.f32 %v2041_v26, %v1967_v30  ;;  %v2846_v45 = vpop.f32.mrb[42].mxu1 }
 0x328   : > { %2371 = vst.msk [vmem:[%s4012_s16 + $0x8] sm:$0xf] %vm2368_vm10, %v2672_v38  ;;  %v2673_v61 = vpack.c.bf16 %v2291_v49, %v2291_v49  ;;  %v2255_v59 = vadd.f32 %v3888_v37, %v2050_v9  ;;  %v2053_v19 = vadd.f32 %v2846_v45, %v3892_v23  ;;  %v2044_v56 = vpop.f32.mrb[43].mxu1  ;;  %v2238_v37 = vsel %vm4270_vm12, 0.0, %v3908_v39 }
 0x329   : > { %2369 = vst.msk [vmem:[%s4012_s16] sm:$0xf] %vm2368_vm10, %v2670_v21  ;;  %v2671_v13 = vpack.c.bf16 %v2289_v14, %v2289_v14  ;;  %v2253_v52 = vadd.f32 %v3900_v4, %v2042_v24  ;;  %v2045_v35 = vadd.f32 %v2044_v56, %v3904_v36  ;;  %v1977_v21 = vsel %vm4275_vm14, 0.0, %v3964_v3 }
 0x32a   : > { %2372 = vst.msk [vmem:[%s4012_s16 + $0xc] sm:$0xf] %vm2368_vm10, %v2673_v61  ;;  %v2278_v6 = vadd.f32 %v3992_v63, %v2255_v59  ;;  %v2256_v31 = vadd.f32 %v2240_v5, %v2053_v19  ;;  %v1975_v45 = vsel %vm4276_vm9, 0.0, %v3948_v8  ;;  %v2248_v8 = vsel %vm3634_vm0, 0.0, %v3978_v22 }
 0x32b   : > { %2370 = vst.msk [vmem:[%s4012_s16 + $0x4] sm:$0xf] %vm2368_vm10, %v2671_v13  ;;  %v2276_v23 = vadd.f32 %v3992_v63, %v2253_v52  ;;  %v2254_v4 = vadd.f32 %v2238_v37, %v2045_v35 }
 0x32c   : > { %v2294_v44 = vmax.f32 %v2278_v6, 0.0  ;;  %v2279_v25 = vadd.f32 %v3992_v63, %v2256_v31 }
 0x32d   : > { %v2292_v41 = vmax.f32 %v2276_v23, 0.0  ;;  %v2277_v36 = vadd.f32 %v3992_v63, %v2254_v4  ;;  %v2849_v11 = vpop.f32.mrb[44].mxu1 }
 0x32e   : > { %v2676_v29 = vpack.c.bf16 %v2294_v44, %v2294_v44  ;;  %v2295_v39 = vmax.f32 %v2279_v25, 0.0  ;;  %v2066_v42 = vadd.f32 %v2849_v11, %v1973_v50  ;;  %v2057_v27 = vpop.f32.mrb[45].mxu1 }
 0x32f   : > { %v2674_v57 = vpack.c.bf16 %v2292_v41, %v2292_v41  ;;  %v2293_v58 = vmax.f32 %v2277_v36, 0.0  ;;  %v2058_v17 = vadd.f32 %v2057_v27, %v1971_v55  ;;  %v2850_v43 = vpop.f32.mrb[46].mxu1 }
 0x330   : > { %2375 = vst.msk [vmem:[%s4012_s16 + $0x18] sm:$0xf] %vm2368_vm10, %v2676_v29  ;;  %v2677_v28 = vpack.c.bf16 %v2295_v39, %v2295_v39  ;;  %v2259_v2 = vadd.f32 %v3920_v33, %v2066_v42  ;;  %v2069_v15 = vadd.f32 %v2850_v43, %v3924_v12  ;;  %v2060_v18 = vpop.f32.mrb[47].mxu1  ;;  %v2242_v33 = vsel %vm4274_vm8, 0.0, %v3940_v10 }
 0x331   : > { %2373 = vst.msk [vmem:[%s4012_s16 + $0x10] sm:$0xf] %vm2368_vm10, %v2674_v57  ;;  %v2675_v38 = vpack.c.bf16 %v2293_v58, %v2293_v58  ;;  %v2257_v16 = vadd.f32 %v3932_v51, %v2058_v17  ;;  %v2061_v49 = vadd.f32 %v2060_v18, %v3936_v34 }
 0x332   : > { %2376 = vst.msk [vmem:[%s4012_s16 + $0x1c] sm:$0xf] %vm2368_vm10, %v2677_v28  ;;  %v2282_v9 = vadd.f32 %v3992_v63, %v2259_v2  ;;  %v2260_v30 = vadd.f32 %v2244_v32, %v2069_v15 }
 0x333   : > { %2374 = vst.msk [vmem:[%s4012_s16 + $0x14] sm:$0xf] %vm2368_vm10, %v2675_v38  ;;  %v2280_v12 = vadd.f32 %v3992_v63, %v2257_v16  ;;  %v2258_v51 = vadd.f32 %v2242_v33, %v2061_v49 }
 0x334   : > { %v2298_v26 = vmax.f32 %v2282_v9, 0.0  ;;  %v2283_v46 = vadd.f32 %v3992_v63, %v2260_v30 }
 0x335   : > { %v2296_v40 = vmax.f32 %v2280_v12, 0.0  ;;  %v2281_v34 = vadd.f32 %v3992_v63, %v2258_v51  ;;  %v2853_v14 = vpop.f32.mrb[48].mxu1 }
 0x336   : > { %v2680_v47 = vpack.c.bf16 %v2298_v26, %v2298_v26  ;;  %v2299_v10 = vmax.f32 %v2283_v46, 0.0  ;;  %v2082_v24 = vadd.f32 %v2853_v14, %v1977_v21  ;;  %v2073_v61 = vpop.f32.mrb[49].mxu1 }
 0x337   : > { %v2678_v59 = vpack.c.bf16 %v2296_v40, %v2296_v40  ;;  %v2297_v19 = vmax.f32 %v2281_v34, 0.0  ;;  %v2074_v56 = vadd.f32 %v2073_v61, %v1975_v45  ;;  %v2854_v13 = vpop.f32.mrb[50].mxu1 }
 0x338   : > { %2379 = vst.msk [vmem:[%s4012_s16 + $0x28] sm:$0xf] %vm2368_vm10, %v2680_v47  ;;  %v2681_v0 = vpack.c.bf16 %v2299_v10, %v2299_v10  ;;  %v2263_v3 = vadd.f32 %v3956_v1, %v2082_v24  ;;  %v2085_v52 = vadd.f32 %v2854_v13, %v3972_v48  ;;  %v2076_v5 = vpop.f32.mrb[51].mxu1  ;;  %v2246_v48 = vsel %vm3577_vm13, 0.0, %v3960_v62 }
 0x339   : > { %2377 = vst.msk [vmem:[%s4012_s16 + $0x20] sm:$0xf] %vm2368_vm10, %v2678_v59  ;;  %v2679_v35 = vpack.c.bf16 %v2297_v19, %v2297_v19  ;;  %v2261_v53 = vadd.f32 %v3968_v54, %v2074_v56  ;;  %v2077_v6 = vadd.f32 %v2076_v5, %v3982_v60 }
 0x33a   : > { %2380 = vst.msk [vmem:[%s4012_s16 + $0x2c] sm:$0xf] %vm2368_vm10, %v2681_v0  ;;  %v2286_v31 = vadd.f32 %v3992_v63, %v2263_v3  ;;  %v2264_v1 = vadd.f32 %v2248_v8, %v2085_v52 }
 0x33b   : > { %2378 = vst.msk [vmem:[%s4012_s16 + $0x24] sm:$0xf] %vm2368_vm10, %v2679_v35  ;;  %v2284_v20 = vadd.f32 %v3992_v63, %v2261_v53  ;;  %v2262_v54 = vadd.f32 %v2246_v48, %v2077_v6 }
 0x33c   : > { %v2302_v22 = vmax.f32 %v2286_v31, 0.0  ;;  %v2287_v60 = vadd.f32 %v3992_v63, %v2264_v1 }
 0x33d   : > { %v2300_v37 = vmax.f32 %v2284_v20, 0.0  ;;  %v2285_v23 = vadd.f32 %v3992_v63, %v2262_v54 }
 0x33e   : > { %v2684_v4 = vpack.c.bf16 %v2302_v22, %v2302_v22  ;;  %v2303_v44 = vmax.f32 %v2287_v60, 0.0 }
 0x33f   : > { %v2682_v25 = vpack.c.bf16 %v2300_v37, %v2300_v37  ;;  %v2301_v41 = vmax.f32 %v2285_v23, 0.0 }
 0x340   : > { %2383 = vst.msk [vmem:[%s4012_s16 + $0x38] sm:$0xf] %vm2368_vm10, %v2684_v4  ;;  %v2685_v7 = vpack.c.bf16 %v2303_v44, %v2303_v44 }
 0x341   : > { %2381 = vst.msk [vmem:[%s4012_s16 + $0x30] sm:$0xf] %vm2368_vm10, %v2682_v25  ;;  %v2683_v62 = vpack.c.bf16 %v2301_v41, %v2301_v41 }
 0x342   : > { %2384 = vst.msk [vmem:[%s4012_s16 + $0x3c] sm:$0xf] %vm2368_vm10, %v2685_v7 }
 0x343   : > { %2382 = vst.msk [vmem:[%s4012_s16 + $0x34] sm:$0xf] %vm2368_vm10, %v2683_v62 }
 0x344 PF: > { %s17_s28 = sadd.s32 1, %s2979_s28   ;;  %s4277_s24 = smov %s2971_s26 }
 0x345   : > { %p14_p11 = scmp.ge.s32.totalorder %s17_s28, 6   ;;  %s4278_s25 = smov %s2975_s27 }
 0x346   : > { %s4279_s26 = smov %s4282_s29  ;;  %s4280_s27 = smov %s4286_s30 }
 0x347   :  { %16 = sbr.rel (!%p14_p11) target bundleno = 3 (0x3), region = 88 }

</bundles_post_ra>
